<compile_context>
chip_gen: v5e
topology: v5e:2x2
jax: 0.10.0
libtpu: 0.0.40
codegen_flags: <defaults>
</compile_context>

<pallas_src>
import functools

import jax
import jax.numpy as jnp
from jax.experimental import pallas as pl
from jax.experimental.pallas import tpu as pltpu

# ----------------------------- small config ---------------------------------
B = 2          # batch
L = 8          # context_tokens sequence length
H = 32         # bert hidden size (token_emb_dim)
NH = 2         # attention heads
I = 64         # FFN intermediate size
VOCAB = 100    # toy vocab
N_LAYERS = 2   # toy BERT depth
N_ITEMS = 16   # rows of item_rep (candidate items)
PAD_ID = 0     # pad_entity_idx / pad token id
LANE = 128     # TPU lane width -> lane-dense scores padding


# ------------------------------- kernel --------------------------------------
def _layer_norm(x, gamma, beta, eps=1e-12):
    # two-pass (centered) variance: matches PyTorch LayerNorm numerics better
    # than E[x^2]-mean^2 and costs one extra tiny reduction.
    mean = jnp.mean(x, axis=-1, keepdims=True)
    xc = x - mean
    var = jnp.mean(xc * xc, axis=-1, keepdims=True)
    return xc * jax.lax.rsqrt(var + eps) * gamma + beta


def fused_crs_forward_kernel(tok_smem,                          # scalar-prefetch (B, L) int32 in SMEM
                             tok_ref, wemb_ref, pte_ref,        # (1,1,L) int32, (VOCAB,H) f32, (L,H) f32
                             emb_g_ref, emb_b_ref,              # (1,H) f32
                             wqkv_ref, bqkv_ref, wo_ref, bo_ref,
                             ln1g_ref, ln1b_ref, w1_ref, b1_ref,
                             w2_ref, b2_ref, ln2g_ref, ln2b_ref,
                             item_ref,                          # (ITEMS_PAD, H) bf16
                             scores_ref,                        # (1,1,ITEMS_PAD) f32 out
                             x_scratch,                         # (L, H) f32 VMEM scratch
                             *, num_heads, num_layers):
    b = pl.program_id(0)
    seq, hid = pte_ref.shape
    dh = hid // num_heads
    scale = 1.0 / float(dh) ** 0.5

    # ---- fused embedding gather: SMEM token ids -> dynamic VMEM row loads ---
    for j in range(seq):                                        # static unroll, L rows
        tok = tok_smem[b, j]
        x_scratch[pl.ds(j, 1), :] = wemb_ref[pl.ds(tok, 1), :]

    # ---- layer-invariant constants, hoisted & pre-broadcast -----------------
    # additive key-padding bias, pre-broadcast to the full (L, L) score shape
    attn_bias = jnp.broadcast_to(
        jnp.where(tok_ref[0] == PAD_ID, jnp.float32(-1e9), jnp.float32(0.0)),
        (seq, seq))
    # per-head block-diagonal lane masks, pre-broadcast to (L, H)
    lane_idx = jax.lax.broadcasted_iota(jnp.int32, (seq, hid), 1)
    head_masks = [
        jnp.logical_and(lane_idx >= h * dh, lane_idx < (h + 1) * dh)
        .astype(jnp.float32)
        for h in range(num_heads)
    ]

    # ---- embedding sum + LayerNorm; activations stay 2-D (L, H) f32 ---------
    x = _layer_norm(x_scratch[...] + pte_ref[...], emb_g_ref[...], emb_b_ref[...])

    def dense(inp, w_bf16, b_f32):
        # bf16 MXU operands, f32 accumulation; bias add in f32 (VPU)
        return jnp.dot(inp.astype(jnp.bfloat16), w_bf16,
                       preferred_element_type=jnp.float32) + b_f32

    # ---- transformer layers: fully unrolled static loop ---------------------
    for l in range(num_layers):
        # fused Q|K|V projection: one (H, 3H) MXU pass
        qkv = dense(x, wqkv_ref[l], bqkv_ref[l])                # (L, 3H) f32
        q = qkv[:, 0 * hid:1 * hid]
        k = qkv[:, 1 * hid:2 * hid]
        v = qkv[:, 2 * hid:3 * hid]
        q_bf = (q * scale).astype(jnp.bfloat16)

        # multi-head attention without sub-128 lane slicing / concatenation:
        # per head, mask K/V to the head's lane block and contract over the
        # full hidden dim; disjoint lane blocks -> a plain add recombines heads.
        # TODO(synk): at realistic NH/H switch to a (B*NH, L, dh) batched layout
        # (this trick costs NH x the MXU FLOPs; hidden by padding at NH=2/H=32).
        ctx = jnp.zeros((seq, hid), jnp.float32)
        for hm in head_masks:                                   # static NH unroll
            k_h = (k * hm).astype(jnp.bfloat16)                 # f32 mask mul (v5e-safe)
            v_h = (v * hm).astype(jnp.bfloat16)
            s = jax.lax.dot_general(q_bf, k_h, (((1,), (1,)), ((), ())),
                                    preferred_element_type=jnp.float32)
            s = s + attn_bias
            s = s - jnp.max(s, axis=-1, keepdims=True)
            p = jnp.exp(s)
            p = p * pl.reciprocal(jnp.sum(p, axis=-1, keepdims=True), approx=True)
            ctx = ctx + jax.lax.dot_general(p.astype(jnp.bfloat16), v_h,
                                            (((1,), (0,)), ((), ())),
                                            preferred_element_type=jnp.float32)

        attn_out = dense(ctx, wo_ref[l], bo_ref[l])
        x1 = _layer_norm(x + attn_out, ln1g_ref[l], ln1b_ref[l])

        # TODO(synk): HF BERT uses exact erf GELU; tanh approximation kept here
        # for guaranteed Mosaic lowering (small numeric drift vs PyTorch).
        h_mid = jax.nn.gelu(dense(x1, w1_ref[l], b1_ref[l]))
        ffn_out = dense(h_mid, w2_ref[l], b2_ref[l])
        x = _layer_norm(x1 + ffn_out, ln2g_ref[l], ln2b_ref[l])

    # ---- CLS extraction + lane-dense scores = user @ item_rep.T (bf16 MXU) --
    user = x[0:1, :].astype(jnp.bfloat16)                       # (1, H)
    scores_ref[0] = jax.lax.dot_general(
        user, item_ref[...], (((1,), (1,)), ((), ())),
        preferred_element_type=jnp.float32)                     # (1, ITEMS_PAD)


# ---------------------------- parameter setup ---------------------------------
def _dense_w(key, fan_in, fan_out):
    scale = (2.0 / (fan_in + fan_out)) ** 0.5   # xavier-ish, deterministic
    return jax.random.normal(key, (fan_in, fan_out), jnp.float32) * scale


def init_params(key):
    ks = iter(jax.random.split(key, 3 + N_LAYERS * 6))
    params = {
        'word_emb': jax.random.normal(next(ks), (VOCAB, H), jnp.float32) * 0.02,
        'pos_emb': jax.random.normal(next(ks), (L, H), jnp.float32) * 0.02,
        'type_emb': jax.random.normal(next(ks), (2, H), jnp.float32) * 0.02,
        'emb_ln_g': jnp.ones((1, H), jnp.float32),
        'emb_ln_b': jnp.zeros((1, H), jnp.float32),
    }
    wqkv, wo, w1, w2 = [], [], [], []
    for _ in range(N_LAYERS):
        wq = _dense_w(next(ks), H, H)
        wk = _dense_w(next(ks), H, H)
        wv = _dense_w(next(ks), H, H)
        wqkv.append(jnp.concatenate([wq, wk, wv], axis=1))      # (H, 3H)
        wo.append(_dense_w(next(ks), H, H))
        w1.append(_dense_w(next(ks), H, I))
        w2.append(_dense_w(next(ks), I, H))
    # matmul weights stored bf16 (MXU-native, half the DMA bytes);
    # biases / LayerNorm params stay f32 (elementwise path).
    params.update(
        wqkv=jnp.stack(wqkv).astype(jnp.bfloat16),              # (NL, H, 3H)
        bqkv=jnp.zeros((N_LAYERS, 1, 3 * H), jnp.float32),
        wo=jnp.stack(wo).astype(jnp.bfloat16),                  # (NL, H, H)
        bo=jnp.zeros((N_LAYERS, 1, H), jnp.float32),
        ln1_g=jnp.ones((N_LAYERS, 1, H), jnp.float32),
        ln1_b=jnp.zeros((N_LAYERS, 1, H), jnp.float32),
        w1=jnp.stack(w1).astype(jnp.bfloat16),                  # (NL, H, I)
        b1=jnp.zeros((N_LAYERS, 1, I), jnp.float32),
        w2=jnp.stack(w2).astype(jnp.bfloat16),                  # (NL, I, H)
        b2=jnp.zeros((N_LAYERS, 1, H), jnp.float32),
        ln2_g=jnp.ones((N_LAYERS, 1, H), jnp.float32),
        ln2_b=jnp.zeros((N_LAYERS, 1, H), jnp.float32),
    )
    return params


def _cost_estimate(bsz, seq, items_pad):
    mm = 0
    for _ in range(N_LAYERS):
        mm += 2 * seq * H * 3 * H                 # fused QKV
        mm += NH * 2 * (2 * seq * seq * H)        # QK^T + PV (full-H contraction)
        mm += 2 * seq * H * H                     # attention output proj
        mm += 2 * seq * H * I + 2 * seq * I * H   # FFN
    flops = bsz * (mm + 2 * H * items_pad)        # + scores matmul
    trans = bsz * N_LAYERS * (NH * seq * seq + seq * I)
    weight_bytes = (VOCAB * H * 4 + seq * H * 4 + 2 * H * 4
                    + N_LAYERS * (H * 3 * H * 2 + 3 * H * 4 + H * H * 2 + H * 4
                                  + 4 * H * 4 + H * I * 2 + I * 4 + I * H * 2 + H * 4)
                    + items_pad * H * 2)
    io_bytes = bsz * (seq * 4 * 2 + items_pad * 4)
    return pl.CostEstimate(flops=flops, transcendentals=trans,
                           bytes_accessed=weight_bytes + io_bytes)


# ------------------------------ forward pass ----------------------------------
def movie_expert_crs_forward(params, context_entities, context_tokens, item_rep,
                             prediction=0):
    # get_representations(): padding mask + BERT encoder.  context_entities is
    # unused by the reference forward(); kept for interface fidelity.
    del context_entities
    bsz, seq = context_tokens.shape
    tokens = context_tokens.astype(jnp.int32)       # scalar-prefetch copy (SMEM)
    tok_vmem = tokens.reshape(bsz, 1, seq)           # vectorized mask path (VMEM)
    pos_type = params['pos_emb'][:seq] + params['type_emb'][0][None, :]   # (L, H)

    n_items = item_rep.shape[0]
    items_pad = ((n_items + LANE - 1) // LANE) * LANE   # lane-dense scores output
    item_pad = jnp.zeros((items_pad, H), jnp.bfloat16).at[:n_items].set(
        item_rep.astype(jnp.bfloat16))

    args = (tokens, tok_vmem, params['word_emb'], pos_type,
            params['emb_ln_g'], params['emb_ln_b'],
            params['wqkv'], params['bqkv'], params['wo'], params['bo'],
            params['ln1_g'], params['ln1_b'], params['w1'], params['b1'],
            params['w2'], params['b2'], params['ln2_g'], params['ln2_b'],
            item_pad)

    grid_spec = pltpu.PrefetchScalarGridSpec(
        num_scalar_prefetch=1,
        grid=(bsz,),                                  # "parallel" -> 2nd TC on v7x
        in_specs=[
            pl.BlockSpec((1, 1, seq), lambda b, toks: (b, 0, 0)),          # tokens (mask)
            pl.BlockSpec((VOCAB, H), lambda b, toks: (0, 0)),              # word_emb
            pl.BlockSpec((seq, H), lambda b, toks: (0, 0)),                # pos+type emb
            pl.BlockSpec((1, H), lambda b, toks: (0, 0)),                  # emb_ln_g
            pl.BlockSpec((1, H), lambda b, toks: (0, 0)),                  # emb_ln_b
            pl.BlockSpec((N_LAYERS, H, 3 * H), lambda b, toks: (0, 0, 0)), # wqkv
            pl.BlockSpec((N_LAYERS, 1, 3 * H), lambda b, toks: (0, 0, 0)), # bqkv
            pl.BlockSpec((N_LAYERS, H, H), lambda b, toks: (0, 0, 0)),     # wo
            pl.BlockSpec((N_LAYERS, 1, H), lambda b, toks: (0, 0, 0)),     # bo
            pl.BlockSpec((N_LAYERS, 1, H), lambda b, toks: (0, 0, 0)),     # ln1_g
            pl.BlockSpec((N_LAYERS, 1, H), lambda b, toks: (0, 0, 0)),     # ln1_b
            pl.BlockSpec((N_LAYERS, H, I), lambda b, toks: (0, 0, 0)),     # w1
            pl.BlockSpec((N_LAYERS, 1, I), lambda b, toks: (0, 0, 0)),     # b1
            pl.BlockSpec((N_LAYERS, I, H), lambda b, toks: (0, 0, 0)),     # w2
            pl.BlockSpec((N_LAYERS, 1, H), lambda b, toks: (0, 0, 0)),     # b2
            pl.BlockSpec((N_LAYERS, 1, H), lambda b, toks: (0, 0, 0)),     # ln2_g
            pl.BlockSpec((N_LAYERS, 1, H), lambda b, toks: (0, 0, 0)),     # ln2_b
            pl.BlockSpec((items_pad, H), lambda b, toks: (0, 0)),          # item_rep bf16
        ],
        out_specs=pl.BlockSpec((1, 1, items_pad), lambda b, toks: (b, 0, 0)),
        scratch_shapes=[pltpu.VMEM((seq, H), jnp.float32)],
    )

    fused = pl.pallas_call(
        functools.partial(fused_crs_forward_kernel,
                          num_heads=NH, num_layers=N_LAYERS),
        out_shape=jax.ShapeDtypeStruct((bsz, 1, items_pad), jnp.float32),
        grid_spec=grid_spec,
        compiler_params=pltpu.CompilerParams(
            dimension_semantics=("parallel",),
            vmem_limit_bytes=32 * 1024 * 1024),
        cost_estimate=_cost_estimate(bsz, seq, items_pad),
    )

    out = fused(*args)                               # (B, 1, ITEMS_PAD)
    scores = out[:, 0, :n_items]                     # drop lane padding

    # TODO(synk): prediction!=0 in the reference uses F.linear(u, freezed_item_rep.T),
    # shape-inconsistent unless n_items == hidden; only the prediction==0 path is
    # implemented (prediction!=0 reuses the same computation).
    return scores


# ---------------------------------- main ---------------------------------------
if __name__ == "__main__":
    root = jax.random.PRNGKey(0)
    pkey, dkey = jax.random.split(root)
    params = init_params(pkey)

    k1, k2, k3 = jax.random.split(dkey, 3)
    context_tokens = jax.random.randint(k1, (B, L), 0, VOCAB, dtype=jnp.int32)
    context_tokens = context_tokens.at[:, 0].set(2)          # CLS-like token
    context_tokens = context_tokens.at[:, -2:].set(PAD_ID)   # some padding
    context_entities = jax.random.randint(k2, (B, 4), 0, 50, dtype=jnp.int32)
    item_rep = jax.random.normal(k3, (N_ITEMS, H), jnp.float32)

    fwd = jax.jit(movie_expert_crs_forward, static_argnames=("prediction",))
    scores = fwd(params, context_entities, context_tokens, item_rep,
                 prediction=0)
    jax.block_until_ready(scores)
    assert scores.shape == (B, N_ITEMS), scores.shape
    assert bool(jnp.all(jnp.isfinite(scores)))
    print("KERNEL_OK")
</pallas_src>

<mosaic_0001>
module attributes {stable_mosaic.version = 11 : i64} {
  func.func @fused_crs_forward_kernel(%arg0: i32, %arg1: memref<2x8xi32, #tpu.memory_space<smem>>, %arg2: memref<1x1x8xi32, #tpu.memory_space<vmem>>, %arg3: memref<100x32xf32, #tpu.memory_space<vmem>>, %arg4: memref<8x32xf32, #tpu.memory_space<vmem>>, %arg5: memref<1x32xf32, #tpu.memory_space<vmem>>, %arg6: memref<1x32xf32, #tpu.memory_space<vmem>>, %arg7: memref<2x32x96xbf16, #tpu.memory_space<vmem>>, %arg8: memref<2x1x96xf32, #tpu.memory_space<vmem>>, %arg9: memref<2x32x32xbf16, #tpu.memory_space<vmem>>, %arg10: memref<2x1x32xf32, #tpu.memory_space<vmem>>, %arg11: memref<2x1x32xf32, #tpu.memory_space<vmem>>, %arg12: memref<2x1x32xf32, #tpu.memory_space<vmem>>, %arg13: memref<2x32x64xbf16, #tpu.memory_space<vmem>>, %arg14: memref<2x1x64xf32, #tpu.memory_space<vmem>>, %arg15: memref<2x64x32xbf16, #tpu.memory_space<vmem>>, %arg16: memref<2x1x32xf32, #tpu.memory_space<vmem>>, %arg17: memref<2x1x32xf32, #tpu.memory_space<vmem>>, %arg18: memref<2x1x32xf32, #tpu.memory_space<vmem>>, %arg19: memref<128x32xbf16, #tpu.memory_space<vmem>>, %arg20: memref<1x1x128xf32, #tpu.memory_space<vmem>>, %arg21: memref<8x32xf32, #tpu.memory_space<vmem>>) attributes {dimension_semantics = [#tpu.dimension_semantics<parallel>], iteration_bounds = array<i64: 2>, scalar_prefetch = 1 : i64, scratch_operands = 1 : i64, tpu.core_type = #tpu.core_type<tc>, window_params = [{transform_indices = @transform_0, window_bounds = array<i64: 1, 1, 8>}, {pipeline_mode = #tpu.pipeline_mode<synchronous>, transform_indices = @transform_1, window_bounds = array<i64: 100, 32>}, {pipeline_mode = #tpu.pipeline_mode<synchronous>, transform_indices = @transform_2, window_bounds = array<i64: 8, 32>}, {pipeline_mode = #tpu.pipeline_mode<synchronous>, transform_indices = @transform_3, window_bounds = array<i64: 1, 32>}, {pipeline_mode = #tpu.pipeline_mode<synchronous>, transform_indices = @transform_4, window_bounds = array<i64: 1, 32>}, {pipeline_mode = #tpu.pipeline_mode<synchronous>, transform_indices = @transform_5, window_bounds = array<i64: 2, 32, 96>}, {pipeline_mode = #tpu.pipeline_mode<synchronous>, transform_indices = @transform_6, window_bounds = array<i64: 2, 1, 96>}, {pipeline_mode = #tpu.pipeline_mode<synchronous>, transform_indices = @transform_7, window_bounds = array<i64: 2, 32, 32>}, {pipeline_mode = #tpu.pipeline_mode<synchronous>, transform_indices = @transform_8, window_bounds = array<i64: 2, 1, 32>}, {pipeline_mode = #tpu.pipeline_mode<synchronous>, transform_indices = @transform_9, window_bounds = array<i64: 2, 1, 32>}, {pipeline_mode = #tpu.pipeline_mode<synchronous>, transform_indices = @transform_10, window_bounds = array<i64: 2, 1, 32>}, {pipeline_mode = #tpu.pipeline_mode<synchronous>, transform_indices = @transform_11, window_bounds = array<i64: 2, 32, 64>}, {pipeline_mode = #tpu.pipeline_mode<synchronous>, transform_indices = @transform_12, window_bounds = array<i64: 2, 1, 64>}, {pipeline_mode = #tpu.pipeline_mode<synchronous>, transform_indices = @transform_13, window_bounds = array<i64: 2, 64, 32>}, {pipeline_mode = #tpu.pipeline_mode<synchronous>, transform_indices = @transform_14, window_bounds = array<i64: 2, 1, 32>}, {pipeline_mode = #tpu.pipeline_mode<synchronous>, transform_indices = @transform_15, window_bounds = array<i64: 2, 1, 32>}, {pipeline_mode = #tpu.pipeline_mode<synchronous>, transform_indices = @transform_16, window_bounds = array<i64: 2, 1, 32>}, {pipeline_mode = #tpu.pipeline_mode<synchronous>, transform_indices = @transform_17, window_bounds = array<i64: 128, 32>}, {transform_indices = @transform_18, window_bounds = array<i64: 1, 1, 128>}]} {
    %0 = arith.index_cast %arg0 : i32 to index
    %c0 = arith.constant 0 : index
    %1 = memref.load %arg1[%0, %c0] : memref<2x8xi32, #tpu.memory_space<smem>>
    %2 = arith.index_cast %1 : i32 to index
    %c0_0 = arith.constant 0 : index
    %3 = vector.load %arg3[%2, %c0_0] : memref<100x32xf32, #tpu.memory_space<vmem>>, vector<1x32xf32>
    %c0_1 = arith.constant 0 : index
    %c0_2 = arith.constant 0 : index
    %4 = vector.load %arg21[%c0_1, %c0_2] : memref<8x32xf32, #tpu.memory_space<vmem>>, vector<1x32xf32>
    tpu.vector_store %arg21[%c0_1, %c0_2], %3 {strides = array<i32>} : memref<8x32xf32, #tpu.memory_space<vmem>>, vector<1x32xf32>,
    %5 = arith.index_cast %arg0 : i32 to index
    %c1 = arith.constant 1 : index
    %6 = memref.load %arg1[%5, %c1] : memref<2x8xi32, #tpu.memory_space<smem>>
    %7 = arith.index_cast %6 : i32 to index
    %c0_3 = arith.constant 0 : index
    %8 = vector.load %arg3[%7, %c0_3] : memref<100x32xf32, #tpu.memory_space<vmem>>, vector<1x32xf32>
    %c1_4 = arith.constant 1 : index
    %c0_5 = arith.constant 0 : index
    %9 = vector.load %arg21[%c1_4, %c0_5] : memref<8x32xf32, #tpu.memory_space<vmem>>, vector<1x32xf32>
    tpu.vector_store %arg21[%c1_4, %c0_5], %8 {strides = array<i32>} : memref<8x32xf32, #tpu.memory_space<vmem>>, vector<1x32xf32>,
    %10 = arith.index_cast %arg0 : i32 to index
    %c2 = arith.constant 2 : index
    %11 = memref.load %arg1[%10, %c2] : memref<2x8xi32, #tpu.memory_space<smem>>
    %12 = arith.index_cast %11 : i32 to index
    %c0_6 = arith.constant 0 : index
    %13 = vector.load %arg3[%12, %c0_6] : memref<100x32xf32, #tpu.memory_space<vmem>>, vector<1x32xf32>
    %c2_7 = arith.constant 2 : index
    %c0_8 = arith.constant 0 : index
    %14 = vector.load %arg21[%c2_7, %c0_8] : memref<8x32xf32, #tpu.memory_space<vmem>>, vector<1x32xf32>
    tpu.vector_store %arg21[%c2_7, %c0_8], %13 {strides = array<i32>} : memref<8x32xf32, #tpu.memory_space<vmem>>, vector<1x32xf32>,
    %15 = arith.index_cast %arg0 : i32 to index
    %c3 = arith.constant 3 : index
    %16 = memref.load %arg1[%15, %c3] : memref<2x8xi32, #tpu.memory_space<smem>>
    %17 = arith.index_cast %16 : i32 to index
    %c0_9 = arith.constant 0 : index
    %18 = vector.load %arg3[%17, %c0_9] : memref<100x32xf32, #tpu.memory_space<vmem>>, vector<1x32xf32>
    %c3_10 = arith.constant 3 : index
    %c0_11 = arith.constant 0 : index
    %19 = vector.load %arg21[%c3_10, %c0_11] : memref<8x32xf32, #tpu.memory_space<vmem>>, vector<1x32xf32>
    tpu.vector_store %arg21[%c3_10, %c0_11], %18 {strides = array<i32>} : memref<8x32xf32, #tpu.memory_space<vmem>>, vector<1x32xf32>,
    %20 = arith.index_cast %arg0 : i32 to index
    %c4 = arith.constant 4 : index
    %21 = memref.load %arg1[%20, %c4] : memref<2x8xi32, #tpu.memory_space<smem>>
    %22 = arith.index_cast %21 : i32 to index
    %c0_12 = arith.constant 0 : index
    %23 = vector.load %arg3[%22, %c0_12] : memref<100x32xf32, #tpu.memory_space<vmem>>, vector<1x32xf32>
    %c4_13 = arith.constant 4 : index
    %c0_14 = arith.constant 0 : index
    %24 = vector.load %arg21[%c4_13, %c0_14] : memref<8x32xf32, #tpu.memory_space<vmem>>, vector<1x32xf32>
    tpu.vector_store %arg21[%c4_13, %c0_14], %23 {strides = array<i32>} : memref<8x32xf32, #tpu.memory_space<vmem>>, vector<1x32xf32>,
    %25 = arith.index_cast %arg0 : i32 to index
    %c5 = arith.constant 5 : index
    %26 = memref.load %arg1[%25, %c5] : memref<2x8xi32, #tpu.memory_space<smem>>
    %27 = arith.index_cast %26 : i32 to index
    %c0_15 = arith.constant 0 : index
    %28 = vector.load %arg3[%27, %c0_15] : memref<100x32xf32, #tpu.memory_space<vmem>>, vector<1x32xf32>
    %c5_16 = arith.constant 5 : index
    %c0_17 = arith.constant 0 : index
    %29 = vector.load %arg21[%c5_16, %c0_17] : memref<8x32xf32, #tpu.memory_space<vmem>>, vector<1x32xf32>
    tpu.vector_store %arg21[%c5_16, %c0_17], %28 {strides = array<i32>} : memref<8x32xf32, #tpu.memory_space<vmem>>, vector<1x32xf32>,
    %30 = arith.index_cast %arg0 : i32 to index
    %c6 = arith.constant 6 : index
    %31 = memref.load %arg1[%30, %c6] : memref<2x8xi32, #tpu.memory_space<smem>>
    %32 = arith.index_cast %31 : i32 to index
    %c0_18 = arith.constant 0 : index
    %33 = vector.load %arg3[%32, %c0_18] : memref<100x32xf32, #tpu.memory_space<vmem>>, vector<1x32xf32>
    %c6_19 = arith.constant 6 : index
    %c0_20 = arith.constant 0 : index
    %34 = vector.load %arg21[%c6_19, %c0_20] : memref<8x32xf32, #tpu.memory_space<vmem>>, vector<1x32xf32>
    tpu.vector_store %arg21[%c6_19, %c0_20], %33 {strides = array<i32>} : memref<8x32xf32, #tpu.memory_space<vmem>>, vector<1x32xf32>,
    %35 = arith.index_cast %arg0 : i32 to index
    %c7 = arith.constant 7 : index
    %36 = memref.load %arg1[%35, %c7] : memref<2x8xi32, #tpu.memory_space<smem>>
    %37 = arith.index_cast %36 : i32 to index
    %c0_21 = arith.constant 0 : index
    %38 = vector.load %arg3[%37, %c0_21] : memref<100x32xf32, #tpu.memory_space<vmem>>, vector<1x32xf32>
    %c7_22 = arith.constant 7 : index
    %c0_23 = arith.constant 0 : index
    %39 = vector.load %arg21[%c7_22, %c0_23] : memref<8x32xf32, #tpu.memory_space<vmem>>, vector<1x32xf32>
    tpu.vector_store %arg21[%c7_22, %c0_23], %38 {strides = array<i32>} : memref<8x32xf32, #tpu.memory_space<vmem>>, vector<1x32xf32>,
    %c0_24 = arith.constant 0 : index
    %c0_25 = arith.constant 0 : index
    %c0_26 = arith.constant 0 : index
    %40 = vector.load %arg2[%c0_24, %c0_25, %c0_26] : memref<1x1x8xi32, #tpu.memory_space<vmem>>, vector<1x1x8xi32>
    %41 = vector.shape_cast %40 : vector<1x1x8xi32> to vector<1x8xi32>
    %c0_i32 = arith.constant 0 : i32
    %42 = vector.broadcast %c0_i32 : i32 to vector<1x8xi32>
    %43 = arith.cmpi eq, %41, %42 : vector<1x8xi32>
    %cst = arith.constant -1.000000e+09 : f32
    %cst_27 = arith.constant 0.000000e+00 : f32
    %44 = vector.broadcast %cst : f32 to vector<1x8xf32>
    %45 = vector.broadcast %cst_27 : f32 to vector<1x8xf32>
    %46 = arith.select %43, %44, %45 : vector<1x8xi1>, vector<1x8xf32>
    %47 = vector.shape_cast %46 : vector<1x8xf32> to vector<1x8xf32>
    %48 = vector.broadcast %47 : vector<1x8xf32> to vector<8x8xf32>
    %49 = tpu.iota {dimensions = array<i32: 1>} : vector<8x32xi32>
    %c0_i32_28 = arith.constant 0 : i32
    %50 = vector.broadcast %c0_i32_28 : i32 to vector<8x32xi32>
    %51 = arith.cmpi sge, %49, %50 : vector<8x32xi32>
    %c16_i32 = arith.constant 16 : i32
    %52 = vector.broadcast %c16_i32 : i32 to vector<8x32xi32>
    %53 = arith.cmpi slt, %49, %52 : vector<8x32xi32>
    %54 = arith.andi %51, %53 : vector<8x32xi1>
    %55 = arith.extui %54 : vector<8x32xi1> to vector<8x32xi32>
    %56 = arith.sitofp %55 : vector<8x32xi32> to vector<8x32xf32>
    %c16_i32_29 = arith.constant 16 : i32
    %57 = vector.broadcast %c16_i32_29 : i32 to vector<8x32xi32>
    %58 = arith.cmpi sge, %49, %57 : vector<8x32xi32>
    %c32_i32 = arith.constant 32 : i32
    %59 = vector.broadcast %c32_i32 : i32 to vector<8x32xi32>
    %60 = arith.cmpi slt, %49, %59 : vector<8x32xi32>
    %61 = arith.andi %58, %60 : vector<8x32xi1>
    %62 = arith.extui %61 : vector<8x32xi1> to vector<8x32xi32>
    %63 = arith.sitofp %62 : vector<8x32xi32> to vector<8x32xf32>
    %c0_30 = arith.constant 0 : index
    %c0_31 = arith.constant 0 : index
    %64 = vector.load %arg21[%c0_30, %c0_31] : memref<8x32xf32, #tpu.memory_space<vmem>>, vector<8x32xf32>
    %c0_32 = arith.constant 0 : index
    %c0_33 = arith.constant 0 : index
    %65 = vector.load %arg4[%c0_32, %c0_33] : memref<8x32xf32, #tpu.memory_space<vmem>>, vector<8x32xf32>
    %66 = arith.addf %64, %65 : vector<8x32xf32>
    %c0_34 = arith.constant 0 : index
    %c0_35 = arith.constant 0 : index
    %67 = vector.load %arg5[%c0_34, %c0_35] : memref<1x32xf32, #tpu.memory_space<vmem>>, vector<1x32xf32>
    %c0_36 = arith.constant 0 : index
    %c0_37 = arith.constant 0 : index
    %68 = vector.load %arg6[%c0_36, %c0_37] : memref<1x32xf32, #tpu.memory_space<vmem>>, vector<1x32xf32>
    %cst_38 = arith.constant dense<0.000000e+00> : vector<8xf32>
    %69 = vector.multi_reduction <add>, %66, %cst_38 [1] : vector<8x32xf32> to vector<8xf32>
    %70 = vector.shape_cast %69 : vector<8xf32> to vector<8x1xf32>
    %cst_39 = arith.constant 3.200000e+01 : f32
    %71 = vector.broadcast %cst_39 : f32 to vector<8x1xf32>
    %72 = arith.divf %70, %71 : vector<8x1xf32>
    %73 = vector.broadcast %72 : vector<8x1xf32> to vector<8x32xf32>
    %74 = arith.subf %66, %73 : vector<8x32xf32>
    %75 = arith.mulf %74, %74 : vector<8x32xf32>
    %cst_40 = arith.constant dense<0.000000e+00> : vector<8xf32>
    %76 = vector.multi_reduction <add>, %75, %cst_40 [1] : vector<8x32xf32> to vector<8xf32>
    %77 = vector.shape_cast %76 : vector<8xf32> to vector<8x1xf32>
    %cst_41 = arith.constant 3.200000e+01 : f32
    %78 = vector.broadcast %cst_41 : f32 to vector<8x1xf32>
    %79 = arith.divf %77, %78 : vector<8x1xf32>
    %cst_42 = arith.constant 9.99999996E-13 : f32
    %80 = vector.broadcast %cst_42 : f32 to vector<8x1xf32>
    %81 = arith.addf %79, %80 : vector<8x1xf32>
    %82 = math.rsqrt %81 : vector<8x1xf32>
    %83 = vector.broadcast %82 : vector<8x1xf32> to vector<8x32xf32>
    %84 = arith.mulf %74, %83 : vector<8x32xf32>
    %85 = vector.broadcast %67 : vector<1x32xf32> to vector<8x32xf32>
    %86 = arith.mulf %84, %85 : vector<8x32xf32>
    %87 = vector.broadcast %68 : vector<1x32xf32> to vector<8x32xf32>
    %88 = arith.addf %86, %87 : vector<8x32xf32>
    %c0_43 = arith.constant 0 : index
    %c0_44 = arith.constant 0 : index
    %c0_45 = arith.constant 0 : index
    %89 = vector.load %arg7[%c0_43, %c0_44, %c0_45] : memref<2x32x96xbf16, #tpu.memory_space<vmem>>, vector<1x32x96xbf16>
    %90 = vector.shape_cast %89 : vector<1x32x96xbf16> to vector<32x96xbf16>
    %c0_46 = arith.constant 0 : index
    %c0_47 = arith.constant 0 : index
    %c0_48 = arith.constant 0 : index
    %91 = vector.load %arg8[%c0_46, %c0_47, %c0_48] : memref<2x1x96xf32, #tpu.memory_space<vmem>>, vector<1x1x96xf32>
    %92 = vector.shape_cast %91 : vector<1x1x96xf32> to vector<1x96xf32>
    %93 = arith.truncf %88 : vector<8x32xf32> to vector<8x32xbf16>
    %cst_49 = arith.constant dense<0.000000e+00> : vector<8x96xf32>
    %94 = tpu.matmul %93, %90, %cst_49 {dimension_numbers = #tpu.dot_dimension_numbers<[1], [0], [0], [1], [0, 0, 1, 1], [], []>} : vector<8x32xbf16>, vector<32x96xbf16>, vector<8x96xf32> -> vector<8x96xf32>
    %95 = vector.broadcast %92 : vector<1x96xf32> to vector<8x96xf32>
    %96 = arith.addf %94, %95 : vector<8x96xf32>
    %97 = vector.extract_strided_slice %96 {offsets = [0, 0], sizes = [8, 32], strides = [1, 1]} : vector<8x96xf32> to vector<8x32xf32>
    %98 = vector.extract_strided_slice %96 {offsets = [0, 32], sizes = [8, 32], strides = [1, 1]} : vector<8x96xf32> to vector<8x32xf32>
    %99 = vector.extract_strided_slice %96 {offsets = [0, 64], sizes = [8, 32], strides = [1, 1]} : vector<8x96xf32> to vector<8x32xf32>
    %cst_50 = arith.constant 2.500000e-01 : f32
    %100 = vector.broadcast %cst_50 : f32 to vector<8x32xf32>
    %101 = arith.mulf %97, %100 : vector<8x32xf32>
    %102 = arith.truncf %101 : vector<8x32xf32> to vector<8x32xbf16>
    %cst_51 = arith.constant 0.000000e+00 : f32
    %103 = vector.broadcast %cst_51 : f32 to vector<8x32xf32>
    %104 = arith.mulf %98, %56 : vector<8x32xf32>
    %105 = arith.truncf %104 : vector<8x32xf32> to vector<8x32xbf16>
    %106 = arith.mulf %99, %56 : vector<8x32xf32>
    %107 = arith.truncf %106 : vector<8x32xf32> to vector<8x32xbf16>
    %cst_52 = arith.constant dense<0.000000e+00> : vector<8x8xf32>
    %108 = tpu.matmul %102, %105, %cst_52 {dimension_numbers = #tpu.dot_dimension_numbers<[1], [1], [0], [0], [0, 0, 1, 0], [], []>} : vector<8x32xbf16>, vector<8x32xbf16>, vector<8x8xf32> -> vector<8x8xf32>
    %109 = arith.addf %108, %48 : vector<8x8xf32>
    %cst_53 = arith.constant dense<0xFF800000> : vector<8xf32>
    %110 = vector.multi_reduction <maximumf>, %109, %cst_53 [1] : vector<8x8xf32> to vector<8xf32>
    %111 = vector.shape_cast %110 : vector<8xf32> to vector<8x1xf32>
    %112 = vector.broadcast %111 : vector<8x1xf32> to vector<8x8xf32>
    %113 = arith.subf %109, %112 : vector<8x8xf32>
    %114 = math.exp %113 : vector<8x8xf32>
    %cst_54 = arith.constant dense<0.000000e+00> : vector<8xf32>
    %115 = vector.multi_reduction <add>, %114, %cst_54 [1] : vector<8x8xf32> to vector<8xf32>
    %116 = vector.shape_cast %115 : vector<8xf32> to vector<8x1xf32>
    %117 = tpu.reciprocal %116 {approx = true} : vector<8x1xf32> -> vector<8x1xf32>
    %118 = vector.broadcast %117 : vector<8x1xf32> to vector<8x8xf32>
    %119 = arith.mulf %114, %118 : vector<8x8xf32>
    %120 = arith.truncf %119 : vector<8x8xf32> to vector<8x8xbf16>
    %cst_55 = arith.constant dense<0.000000e+00> : vector<8x32xf32>
    %121 = tpu.matmul %120, %107, %cst_55 {dimension_numbers = #tpu.dot_dimension_numbers<[1], [0], [0], [1], [0, 0, 1, 1], [], []>} : vector<8x8xbf16>, vector<8x32xbf16>, vector<8x32xf32> -> vector<8x32xf32>
    %122 = arith.addf %103, %121 : vector<8x32xf32>
    %123 = arith.mulf %98, %63 : vector<8x32xf32>
    %124 = arith.truncf %123 : vector<8x32xf32> to vector<8x32xbf16>
    %125 = arith.mulf %99, %63 : vector<8x32xf32>
    %126 = arith.truncf %125 : vector<8x32xf32> to vector<8x32xbf16>
    %cst_56 = arith.constant dense<0.000000e+00> : vector<8x8xf32>
    %127 = tpu.matmul %102, %124, %cst_56 {dimension_numbers = #tpu.dot_dimension_numbers<[1], [1], [0], [0], [0, 0, 1, 0], [], []>} : vector<8x32xbf16>, vector<8x32xbf16>, vector<8x8xf32> -> vector<8x8xf32>
    %128 = arith.addf %127, %48 : vector<8x8xf32>
    %cst_57 = arith.constant dense<0xFF800000> : vector<8xf32>
    %129 = vector.multi_reduction <maximumf>, %128, %cst_57 [1] : vector<8x8xf32> to vector<8xf32>
    %130 = vector.shape_cast %129 : vector<8xf32> to vector<8x1xf32>
    %131 = vector.broadcast %130 : vector<8x1xf32> to vector<8x8xf32>
    %132 = arith.subf %128, %131 : vector<8x8xf32>
    %133 = math.exp %132 : vector<8x8xf32>
    %cst_58 = arith.constant dense<0.000000e+00> : vector<8xf32>
    %134 = vector.multi_reduction <add>, %133, %cst_58 [1] : vector<8x8xf32> to vector<8xf32>
    %135 = vector.shape_cast %134 : vector<8xf32> to vector<8x1xf32>
    %136 = tpu.reciprocal %135 {approx = true} : vector<8x1xf32> -> vector<8x1xf32>
    %137 = vector.broadcast %136 : vector<8x1xf32> to vector<8x8xf32>
    %138 = arith.mulf %133, %137 : vector<8x8xf32>
    %139 = arith.truncf %138 : vector<8x8xf32> to vector<8x8xbf16>
    %cst_59 = arith.constant dense<0.000000e+00> : vector<8x32xf32>
    %140 = tpu.matmul %139, %126, %cst_59 {dimension_numbers = #tpu.dot_dimension_numbers<[1], [0], [0], [1], [0, 0, 1, 1], [], []>} : vector<8x8xbf16>, vector<8x32xbf16>, vector<8x32xf32> -> vector<8x32xf32>
    %141 = arith.addf %122, %140 : vector<8x32xf32>
    %c0_60 = arith.constant 0 : index
    %c0_61 = arith.constant 0 : index
    %c0_62 = arith.constant 0 : index
    %142 = vector.load %arg9[%c0_60, %c0_61, %c0_62] : memref<2x32x32xbf16, #tpu.memory_space<vmem>>, vector<1x32x32xbf16>
    %143 = vector.shape_cast %142 : vector<1x32x32xbf16> to vector<32x32xbf16>
    %c0_63 = arith.constant 0 : index
    %c0_64 = arith.constant 0 : index
    %c0_65 = arith.constant 0 : index
    %144 = vector.load %arg10[%c0_63, %c0_64, %c0_65] : memref<2x1x32xf32, #tpu.memory_space<vmem>>, vector<1x1x32xf32>
    %145 = vector.shape_cast %144 : vector<1x1x32xf32> to vector<1x32xf32>
    %146 = arith.truncf %141 : vector<8x32xf32> to vector<8x32xbf16>
    %cst_66 = arith.constant dense<0.000000e+00> : vector<8x32xf32>
    %147 = tpu.matmul %146, %143, %cst_66 {dimension_numbers = #tpu.dot_dimension_numbers<[1], [0], [0], [1], [0, 0, 1, 1], [], []>} : vector<8x32xbf16>, vector<32x32xbf16>, vector<8x32xf32> -> vector<8x32xf32>
    %148 = vector.broadcast %145 : vector<1x32xf32> to vector<8x32xf32>
    %149 = arith.addf %147, %148 : vector<8x32xf32>
    %150 = arith.addf %88, %149 : vector<8x32xf32>
    %c0_67 = arith.constant 0 : index
    %c0_68 = arith.constant 0 : index
    %c0_69 = arith.constant 0 : index
    %151 = vector.load %arg11[%c0_67, %c0_68, %c0_69] : memref<2x1x32xf32, #tpu.memory_space<vmem>>, vector<1x1x32xf32>
    %152 = vector.shape_cast %151 : vector<1x1x32xf32> to vector<1x32xf32>
    %c0_70 = arith.constant 0 : index
    %c0_71 = arith.constant 0 : index
    %c0_72 = arith.constant 0 : index
    %153 = vector.load %arg12[%c0_70, %c0_71, %c0_72] : memref<2x1x32xf32, #tpu.memory_space<vmem>>, vector<1x1x32xf32>
    %154 = vector.shape_cast %153 : vector<1x1x32xf32> to vector<1x32xf32>
    %cst_73 = arith.constant dense<0.000000e+00> : vector<8xf32>
    %155 = vector.multi_reduction <add>, %150, %cst_73 [1] : vector<8x32xf32> to vector<8xf32>
    %156 = vector.shape_cast %155 : vector<8xf32> to vector<8x1xf32>
    %cst_74 = arith.constant 3.200000e+01 : f32
    %157 = vector.broadcast %cst_74 : f32 to vector<8x1xf32>
    %158 = arith.divf %156, %157 : vector<8x1xf32>
    %159 = vector.broadcast %158 : vector<8x1xf32> to vector<8x32xf32>
    %160 = arith.subf %150, %159 : vector<8x32xf32>
    %161 = arith.mulf %160, %160 : vector<8x32xf32>
    %cst_75 = arith.constant dense<0.000000e+00> : vector<8xf32>
    %162 = vector.multi_reduction <add>, %161, %cst_75 [1] : vector<8x32xf32> to vector<8xf32>
    %163 = vector.shape_cast %162 : vector<8xf32> to vector<8x1xf32>
    %cst_76 = arith.constant 3.200000e+01 : f32
    %164 = vector.broadcast %cst_76 : f32 to vector<8x1xf32>
    %165 = arith.divf %163, %164 : vector<8x1xf32>
    %cst_77 = arith.constant 9.99999996E-13 : f32
    %166 = vector.broadcast %cst_77 : f32 to vector<8x1xf32>
    %167 = arith.addf %165, %166 : vector<8x1xf32>
    %168 = math.rsqrt %167 : vector<8x1xf32>
    %169 = vector.broadcast %168 : vector<8x1xf32> to vector<8x32xf32>
    %170 = arith.mulf %160, %169 : vector<8x32xf32>
    %171 = vector.broadcast %152 : vector<1x32xf32> to vector<8x32xf32>
    %172 = arith.mulf %170, %171 : vector<8x32xf32>
    %173 = vector.broadcast %154 : vector<1x32xf32> to vector<8x32xf32>
    %174 = arith.addf %172, %173 : vector<8x32xf32>
    %c0_78 = arith.constant 0 : index
    %c0_79 = arith.constant 0 : index
    %c0_80 = arith.constant 0 : index
    %175 = vector.load %arg13[%c0_78, %c0_79, %c0_80] : memref<2x32x64xbf16, #tpu.memory_space<vmem>>, vector<1x32x64xbf16>
    %176 = vector.shape_cast %175 : vector<1x32x64xbf16> to vector<32x64xbf16>
    %c0_81 = arith.constant 0 : index
    %c0_82 = arith.constant 0 : index
    %c0_83 = arith.constant 0 : index
    %177 = vector.load %arg14[%c0_81, %c0_82, %c0_83] : memref<2x1x64xf32, #tpu.memory_space<vmem>>, vector<1x1x64xf32>
    %178 = vector.shape_cast %177 : vector<1x1x64xf32> to vector<1x64xf32>
    %179 = arith.truncf %174 : vector<8x32xf32> to vector<8x32xbf16>
    %cst_84 = arith.constant dense<0.000000e+00> : vector<8x64xf32>
    %180 = tpu.matmul %179, %176, %cst_84 {dimension_numbers = #tpu.dot_dimension_numbers<[1], [0], [0], [1], [0, 0, 1, 1], [], []>} : vector<8x32xbf16>, vector<32x64xbf16>, vector<8x64xf32> -> vector<8x64xf32>
    %181 = vector.broadcast %178 : vector<1x64xf32> to vector<8x64xf32>
    %182 = arith.addf %180, %181 : vector<8x64xf32>
    %183 = arith.mulf %182, %182 : vector<8x64xf32>
    %184 = arith.mulf %182, %183 : vector<8x64xf32>
    %cst_85 = arith.constant 4.471500e-02 : f32
    %185 = vector.broadcast %cst_85 : f32 to vector<8x64xf32>
    %186 = arith.mulf %185, %184 : vector<8x64xf32>
    %187 = arith.addf %182, %186 : vector<8x64xf32>
    %cst_86 = arith.constant 0.797884583 : f32
    %188 = vector.broadcast %cst_86 : f32 to vector<8x64xf32>
    %189 = arith.mulf %188, %187 : vector<8x64xf32>
    %190 = math.tanh %189 : vector<8x64xf32>
    %cst_87 = arith.constant 1.000000e+00 : f32
    %191 = vector.broadcast %cst_87 : f32 to vector<8x64xf32>
    %192 = arith.addf %191, %190 : vector<8x64xf32>
    %cst_88 = arith.constant 5.000000e-01 : f32
    %193 = vector.broadcast %cst_88 : f32 to vector<8x64xf32>
    %194 = arith.mulf %193, %192 : vector<8x64xf32>
    %195 = arith.mulf %182, %194 : vector<8x64xf32>
    %c0_89 = arith.constant 0 : index
    %c0_90 = arith.constant 0 : index
    %c0_91 = arith.constant 0 : index
    %196 = vector.load %arg15[%c0_89, %c0_90, %c0_91] : memref<2x64x32xbf16, #tpu.memory_space<vmem>>, vector<1x64x32xbf16>
    %197 = vector.shape_cast %196 : vector<1x64x32xbf16> to vector<64x32xbf16>
    %c0_92 = arith.constant 0 : index
    %c0_93 = arith.constant 0 : index
    %c0_94 = arith.constant 0 : index
    %198 = vector.load %arg16[%c0_92, %c0_93, %c0_94] : memref<2x1x32xf32, #tpu.memory_space<vmem>>, vector<1x1x32xf32>
    %199 = vector.shape_cast %198 : vector<1x1x32xf32> to vector<1x32xf32>
    %200 = arith.truncf %195 : vector<8x64xf32> to vector<8x64xbf16>
    %cst_95 = arith.constant dense<0.000000e+00> : vector<8x32xf32>
    %201 = tpu.matmul %200, %197, %cst_95 {dimension_numbers = #tpu.dot_dimension_numbers<[1], [0], [0], [1], [0, 0, 1, 1], [], []>} : vector<8x64xbf16>, vector<64x32xbf16>, vector<8x32xf32> -> vector<8x32xf32>
    %202 = vector.broadcast %199 : vector<1x32xf32> to vector<8x32xf32>
    %203 = arith.addf %201, %202 : vector<8x32xf32>
    %204 = arith.addf %174, %203 : vector<8x32xf32>
    %c0_96 = arith.constant 0 : index
    %c0_97 = arith.constant 0 : index
    %c0_98 = arith.constant 0 : index
    %205 = vector.load %arg17[%c0_96, %c0_97, %c0_98] : memref<2x1x32xf32, #tpu.memory_space<vmem>>, vector<1x1x32xf32>
    %206 = vector.shape_cast %205 : vector<1x1x32xf32> to vector<1x32xf32>
    %c0_99 = arith.constant 0 : index
    %c0_100 = arith.constant 0 : index
    %c0_101 = arith.constant 0 : index
    %207 = vector.load %arg18[%c0_99, %c0_100, %c0_101] : memref<2x1x32xf32, #tpu.memory_space<vmem>>, vector<1x1x32xf32>
    %208 = vector.shape_cast %207 : vector<1x1x32xf32> to vector<1x32xf32>
    %cst_102 = arith.constant dense<0.000000e+00> : vector<8xf32>
    %209 = vector.multi_reduction <add>, %204, %cst_102 [1] : vector<8x32xf32> to vector<8xf32>
    %210 = vector.shape_cast %209 : vector<8xf32> to vector<8x1xf32>
    %cst_103 = arith.constant 3.200000e+01 : f32
    %211 = vector.broadcast %cst_103 : f32 to vector<8x1xf32>
    %212 = arith.divf %210, %211 : vector<8x1xf32>
    %213 = vector.broadcast %212 : vector<8x1xf32> to vector<8x32xf32>
    %214 = arith.subf %204, %213 : vector<8x32xf32>
    %215 = arith.mulf %214, %214 : vector<8x32xf32>
    %cst_104 = arith.constant dense<0.000000e+00> : vector<8xf32>
    %216 = vector.multi_reduction <add>, %215, %cst_104 [1] : vector<8x32xf32> to vector<8xf32>
    %217 = vector.shape_cast %216 : vector<8xf32> to vector<8x1xf32>
    %cst_105 = arith.constant 3.200000e+01 : f32
    %218 = vector.broadcast %cst_105 : f32 to vector<8x1xf32>
    %219 = arith.divf %217, %218 : vector<8x1xf32>
    %cst_106 = arith.constant 9.99999996E-13 : f32
    %220 = vector.broadcast %cst_106 : f32 to vector<8x1xf32>
    %221 = arith.addf %219, %220 : vector<8x1xf32>
    %222 = math.rsqrt %221 : vector<8x1xf32>
    %223 = vector.broadcast %222 : vector<8x1xf32> to vector<8x32xf32>
    %224 = arith.mulf %214, %223 : vector<8x32xf32>
    %225 = vector.broadcast %206 : vector<1x32xf32> to vector<8x32xf32>
    %226 = arith.mulf %224, %225 : vector<8x32xf32>
    %227 = vector.broadcast %208 : vector<1x32xf32> to vector<8x32xf32>
    %228 = arith.addf %226, %227 : vector<8x32xf32>
    %c1_107 = arith.constant 1 : index
    %c0_108 = arith.constant 0 : index
    %c0_109 = arith.constant 0 : index
    %229 = vector.load %arg7[%c1_107, %c0_108, %c0_109] : memref<2x32x96xbf16, #tpu.memory_space<vmem>>, vector<1x32x96xbf16>
    %230 = vector.shape_cast %229 : vector<1x32x96xbf16> to vector<32x96xbf16>
    %c1_110 = arith.constant 1 : index
    %c0_111 = arith.constant 0 : index
    %c0_112 = arith.constant 0 : index
    %231 = vector.load %arg8[%c1_110, %c0_111, %c0_112] : memref<2x1x96xf32, #tpu.memory_space<vmem>>, vector<1x1x96xf32>
    %232 = vector.shape_cast %231 : vector<1x1x96xf32> to vector<1x96xf32>
    %233 = arith.truncf %228 : vector<8x32xf32> to vector<8x32xbf16>
    %cst_113 = arith.constant dense<0.000000e+00> : vector<8x96xf32>
    %234 = tpu.matmul %233, %230, %cst_113 {dimension_numbers = #tpu.dot_dimension_numbers<[1], [0], [0], [1], [0, 0, 1, 1], [], []>} : vector<8x32xbf16>, vector<32x96xbf16>, vector<8x96xf32> -> vector<8x96xf32>
    %235 = vector.broadcast %232 : vector<1x96xf32> to vector<8x96xf32>
    %236 = arith.addf %234, %235 : vector<8x96xf32>
    %237 = vector.extract_strided_slice %236 {offsets = [0, 0], sizes = [8, 32], strides = [1, 1]} : vector<8x96xf32> to vector<8x32xf32>
    %238 = vector.extract_strided_slice %236 {offsets = [0, 32], sizes = [8, 32], strides = [1, 1]} : vector<8x96xf32> to vector<8x32xf32>
    %239 = vector.extract_strided_slice %236 {offsets = [0, 64], sizes = [8, 32], strides = [1, 1]} : vector<8x96xf32> to vector<8x32xf32>
    %cst_114 = arith.constant 2.500000e-01 : f32
    %240 = vector.broadcast %cst_114 : f32 to vector<8x32xf32>
    %241 = arith.mulf %237, %240 : vector<8x32xf32>
    %242 = arith.truncf %241 : vector<8x32xf32> to vector<8x32xbf16>
    %cst_115 = arith.constant 0.000000e+00 : f32
    %243 = vector.broadcast %cst_115 : f32 to vector<8x32xf32>
    %244 = arith.mulf %238, %56 : vector<8x32xf32>
    %245 = arith.truncf %244 : vector<8x32xf32> to vector<8x32xbf16>
    %246 = arith.mulf %239, %56 : vector<8x32xf32>
    %247 = arith.truncf %246 : vector<8x32xf32> to vector<8x32xbf16>
    %cst_116 = arith.constant dense<0.000000e+00> : vector<8x8xf32>
    %248 = tpu.matmul %242, %245, %cst_116 {dimension_numbers = #tpu.dot_dimension_numbers<[1], [1], [0], [0], [0, 0, 1, 0], [], []>} : vector<8x32xbf16>, vector<8x32xbf16>, vector<8x8xf32> -> vector<8x8xf32>
    %249 = arith.addf %248, %48 : vector<8x8xf32>
    %cst_117 = arith.constant dense<0xFF800000> : vector<8xf32>
    %250 = vector.multi_reduction <maximumf>, %249, %cst_117 [1] : vector<8x8xf32> to vector<8xf32>
    %251 = vector.shape_cast %250 : vector<8xf32> to vector<8x1xf32>
    %252 = vector.broadcast %251 : vector<8x1xf32> to vector<8x8xf32>
    %253 = arith.subf %249, %252 : vector<8x8xf32>
    %254 = math.exp %253 : vector<8x8xf32>
    %cst_118 = arith.constant dense<0.000000e+00> : vector<8xf32>
    %255 = vector.multi_reduction <add>, %254, %cst_118 [1] : vector<8x8xf32> to vector<8xf32>
    %256 = vector.shape_cast %255 : vector<8xf32> to vector<8x1xf32>
    %257 = tpu.reciprocal %256 {approx = true} : vector<8x1xf32> -> vector<8x1xf32>
    %258 = vector.broadcast %257 : vector<8x1xf32> to vector<8x8xf32>
    %259 = arith.mulf %254, %258 : vector<8x8xf32>
    %260 = arith.truncf %259 : vector<8x8xf32> to vector<8x8xbf16>
    %cst_119 = arith.constant dense<0.000000e+00> : vector<8x32xf32>
    %261 = tpu.matmul %260, %247, %cst_119 {dimension_numbers = #tpu.dot_dimension_numbers<[1], [0], [0], [1], [0, 0, 1, 1], [], []>} : vector<8x8xbf16>, vector<8x32xbf16>, vector<8x32xf32> -> vector<8x32xf32>
    %262 = arith.addf %243, %261 : vector<8x32xf32>
    %263 = arith.mulf %238, %63 : vector<8x32xf32>
    %264 = arith.truncf %263 : vector<8x32xf32> to vector<8x32xbf16>
    %265 = arith.mulf %239, %63 : vector<8x32xf32>
    %266 = arith.truncf %265 : vector<8x32xf32> to vector<8x32xbf16>
    %cst_120 = arith.constant dense<0.000000e+00> : vector<8x8xf32>
    %267 = tpu.matmul %242, %264, %cst_120 {dimension_numbers = #tpu.dot_dimension_numbers<[1], [1], [0], [0], [0, 0, 1, 0], [], []>} : vector<8x32xbf16>, vector<8x32xbf16>, vector<8x8xf32> -> vector<8x8xf32>
    %268 = arith.addf %267, %48 : vector<8x8xf32>
    %cst_121 = arith.constant dense<0xFF800000> : vector<8xf32>
    %269 = vector.multi_reduction <maximumf>, %268, %cst_121 [1] : vector<8x8xf32> to vector<8xf32>
    %270 = vector.shape_cast %269 : vector<8xf32> to vector<8x1xf32>
    %271 = vector.broadcast %270 : vector<8x1xf32> to vector<8x8xf32>
    %272 = arith.subf %268, %271 : vector<8x8xf32>
    %273 = math.exp %272 : vector<8x8xf32>
    %cst_122 = arith.constant dense<0.000000e+00> : vector<8xf32>
    %274 = vector.multi_reduction <add>, %273, %cst_122 [1] : vector<8x8xf32> to vector<8xf32>
    %275 = vector.shape_cast %274 : vector<8xf32> to vector<8x1xf32>
    %276 = tpu.reciprocal %275 {approx = true} : vector<8x1xf32> -> vector<8x1xf32>
    %277 = vector.broadcast %276 : vector<8x1xf32> to vector<8x8xf32>
    %278 = arith.mulf %273, %277 : vector<8x8xf32>
    %279 = arith.truncf %278 : vector<8x8xf32> to vector<8x8xbf16>
    %cst_123 = arith.constant dense<0.000000e+00> : vector<8x32xf32>
    %280 = tpu.matmul %279, %266, %cst_123 {dimension_numbers = #tpu.dot_dimension_numbers<[1], [0], [0], [1], [0, 0, 1, 1], [], []>} : vector<8x8xbf16>, vector<8x32xbf16>, vector<8x32xf32> -> vector<8x32xf32>
    %281 = arith.addf %262, %280 : vector<8x32xf32>
    %c1_124 = arith.constant 1 : index
    %c0_125 = arith.constant 0 : index
    %c0_126 = arith.constant 0 : index
    %282 = vector.load %arg9[%c1_124, %c0_125, %c0_126] : memref<2x32x32xbf16, #tpu.memory_space<vmem>>, vector<1x32x32xbf16>
    %283 = vector.shape_cast %282 : vector<1x32x32xbf16> to vector<32x32xbf16>
    %c1_127 = arith.constant 1 : index
    %c0_128 = arith.constant 0 : index
    %c0_129 = arith.constant 0 : index
    %284 = vector.load %arg10[%c1_127, %c0_128, %c0_129] : memref<2x1x32xf32, #tpu.memory_space<vmem>>, vector<1x1x32xf32>
    %285 = vector.shape_cast %284 : vector<1x1x32xf32> to vector<1x32xf32>
    %286 = arith.truncf %281 : vector<8x32xf32> to vector<8x32xbf16>
    %cst_130 = arith.constant dense<0.000000e+00> : vector<8x32xf32>
    %287 = tpu.matmul %286, %283, %cst_130 {dimension_numbers = #tpu.dot_dimension_numbers<[1], [0], [0], [1], [0, 0, 1, 1], [], []>} : vector<8x32xbf16>, vector<32x32xbf16>, vector<8x32xf32> -> vector<8x32xf32>
    %288 = vector.broadcast %285 : vector<1x32xf32> to vector<8x32xf32>
    %289 = arith.addf %287, %288 : vector<8x32xf32>
    %290 = arith.addf %228, %289 : vector<8x32xf32>
    %c1_131 = arith.constant 1 : index
    %c0_132 = arith.constant 0 : index
    %c0_133 = arith.constant 0 : index
    %291 = vector.load %arg11[%c1_131, %c0_132, %c0_133] : memref<2x1x32xf32, #tpu.memory_space<vmem>>, vector<1x1x32xf32>
    %292 = vector.shape_cast %291 : vector<1x1x32xf32> to vector<1x32xf32>
    %c1_134 = arith.constant 1 : index
    %c0_135 = arith.constant 0 : index
    %c0_136 = arith.constant 0 : index
    %293 = vector.load %arg12[%c1_134, %c0_135, %c0_136] : memref<2x1x32xf32, #tpu.memory_space<vmem>>, vector<1x1x32xf32>
    %294 = vector.shape_cast %293 : vector<1x1x32xf32> to vector<1x32xf32>
    %cst_137 = arith.constant dense<0.000000e+00> : vector<8xf32>
    %295 = vector.multi_reduction <add>, %290, %cst_137 [1] : vector<8x32xf32> to vector<8xf32>
    %296 = vector.shape_cast %295 : vector<8xf32> to vector<8x1xf32>
    %cst_138 = arith.constant 3.200000e+01 : f32
    %297 = vector.broadcast %cst_138 : f32 to vector<8x1xf32>
    %298 = arith.divf %296, %297 : vector<8x1xf32>
    %299 = vector.broadcast %298 : vector<8x1xf32> to vector<8x32xf32>
    %300 = arith.subf %290, %299 : vector<8x32xf32>
    %301 = arith.mulf %300, %300 : vector<8x32xf32>
    %cst_139 = arith.constant dense<0.000000e+00> : vector<8xf32>
    %302 = vector.multi_reduction <add>, %301, %cst_139 [1] : vector<8x32xf32> to vector<8xf32>
    %303 = vector.shape_cast %302 : vector<8xf32> to vector<8x1xf32>
    %cst_140 = arith.constant 3.200000e+01 : f32
    %304 = vector.broadcast %cst_140 : f32 to vector<8x1xf32>
    %305 = arith.divf %303, %304 : vector<8x1xf32>
    %cst_141 = arith.constant 9.99999996E-13 : f32
    %306 = vector.broadcast %cst_141 : f32 to vector<8x1xf32>
    %307 = arith.addf %305, %306 : vector<8x1xf32>
    %308 = math.rsqrt %307 : vector<8x1xf32>
    %309 = vector.broadcast %308 : vector<8x1xf32> to vector<8x32xf32>
    %310 = arith.mulf %300, %309 : vector<8x32xf32>
    %311 = vector.broadcast %292 : vector<1x32xf32> to vector<8x32xf32>
    %312 = arith.mulf %310, %311 : vector<8x32xf32>
    %313 = vector.broadcast %294 : vector<1x32xf32> to vector<8x32xf32>
    %314 = arith.addf %312, %313 : vector<8x32xf32>
    %c1_142 = arith.constant 1 : index
    %c0_143 = arith.constant 0 : index
    %c0_144 = arith.constant 0 : index
    %315 = vector.load %arg13[%c1_142, %c0_143, %c0_144] : memref<2x32x64xbf16, #tpu.memory_space<vmem>>, vector<1x32x64xbf16>
    %316 = vector.shape_cast %315 : vector<1x32x64xbf16> to vector<32x64xbf16>
    %c1_145 = arith.constant 1 : index
    %c0_146 = arith.constant 0 : index
    %c0_147 = arith.constant 0 : index
    %317 = vector.load %arg14[%c1_145, %c0_146, %c0_147] : memref<2x1x64xf32, #tpu.memory_space<vmem>>, vector<1x1x64xf32>
    %318 = vector.shape_cast %317 : vector<1x1x64xf32> to vector<1x64xf32>
    %319 = arith.truncf %314 : vector<8x32xf32> to vector<8x32xbf16>
    %cst_148 = arith.constant dense<0.000000e+00> : vector<8x64xf32>
    %320 = tpu.matmul %319, %316, %cst_148 {dimension_numbers = #tpu.dot_dimension_numbers<[1], [0], [0], [1], [0, 0, 1, 1], [], []>} : vector<8x32xbf16>, vector<32x64xbf16>, vector<8x64xf32> -> vector<8x64xf32>
    %321 = vector.broadcast %318 : vector<1x64xf32> to vector<8x64xf32>
    %322 = arith.addf %320, %321 : vector<8x64xf32>
    %323 = arith.mulf %322, %322 : vector<8x64xf32>
    %324 = arith.mulf %322, %323 : vector<8x64xf32>
    %cst_149 = arith.constant 4.471500e-02 : f32
    %325 = vector.broadcast %cst_149 : f32 to vector<8x64xf32>
    %326 = arith.mulf %325, %324 : vector<8x64xf32>
    %327 = arith.addf %322, %326 : vector<8x64xf32>
    %cst_150 = arith.constant 0.797884583 : f32
    %328 = vector.broadcast %cst_150 : f32 to vector<8x64xf32>
    %329 = arith.mulf %328, %327 : vector<8x64xf32>
    %330 = math.tanh %329 : vector<8x64xf32>
    %cst_151 = arith.constant 1.000000e+00 : f32
    %331 = vector.broadcast %cst_151 : f32 to vector<8x64xf32>
    %332 = arith.addf %331, %330 : vector<8x64xf32>
    %cst_152 = arith.constant 5.000000e-01 : f32
    %333 = vector.broadcast %cst_152 : f32 to vector<8x64xf32>
    %334 = arith.mulf %333, %332 : vector<8x64xf32>
    %335 = arith.mulf %322, %334 : vector<8x64xf32>
    %c1_153 = arith.constant 1 : index
    %c0_154 = arith.constant 0 : index
    %c0_155 = arith.constant 0 : index
    %336 = vector.load %arg15[%c1_153, %c0_154, %c0_155] : memref<2x64x32xbf16, #tpu.memory_space<vmem>>, vector<1x64x32xbf16>
    %337 = vector.shape_cast %336 : vector<1x64x32xbf16> to vector<64x32xbf16>
    %c1_156 = arith.constant 1 : index
    %c0_157 = arith.constant 0 : index
    %c0_158 = arith.constant 0 : index
    %338 = vector.load %arg16[%c1_156, %c0_157, %c0_158] : memref<2x1x32xf32, #tpu.memory_space<vmem>>, vector<1x1x32xf32>
    %339 = vector.shape_cast %338 : vector<1x1x32xf32> to vector<1x32xf32>
    %340 = arith.truncf %335 : vector<8x64xf32> to vector<8x64xbf16>
    %cst_159 = arith.constant dense<0.000000e+00> : vector<8x32xf32>
    %341 = tpu.matmul %340, %337, %cst_159 {dimension_numbers = #tpu.dot_dimension_numbers<[1], [0], [0], [1], [0, 0, 1, 1], [], []>} : vector<8x64xbf16>, vector<64x32xbf16>, vector<8x32xf32> -> vector<8x32xf32>
    %342 = vector.broadcast %339 : vector<1x32xf32> to vector<8x32xf32>
    %343 = arith.addf %341, %342 : vector<8x32xf32>
    %344 = arith.addf %314, %343 : vector<8x32xf32>
    %c1_160 = arith.constant 1 : index
    %c0_161 = arith.constant 0 : index
    %c0_162 = arith.constant 0 : index
    %345 = vector.load %arg17[%c1_160, %c0_161, %c0_162] : memref<2x1x32xf32, #tpu.memory_space<vmem>>, vector<1x1x32xf32>
    %346 = vector.shape_cast %345 : vector<1x1x32xf32> to vector<1x32xf32>
    %c1_163 = arith.constant 1 : index
    %c0_164 = arith.constant 0 : index
    %c0_165 = arith.constant 0 : index
    %347 = vector.load %arg18[%c1_163, %c0_164, %c0_165] : memref<2x1x32xf32, #tpu.memory_space<vmem>>, vector<1x1x32xf32>
    %348 = vector.shape_cast %347 : vector<1x1x32xf32> to vector<1x32xf32>
    %cst_166 = arith.constant dense<0.000000e+00> : vector<8xf32>
    %349 = vector.multi_reduction <add>, %344, %cst_166 [1] : vector<8x32xf32> to vector<8xf32>
    %350 = vector.shape_cast %349 : vector<8xf32> to vector<8x1xf32>
    %cst_167 = arith.constant 3.200000e+01 : f32
    %351 = vector.broadcast %cst_167 : f32 to vector<8x1xf32>
    %352 = arith.divf %350, %351 : vector<8x1xf32>
    %353 = vector.broadcast %352 : vector<8x1xf32> to vector<8x32xf32>
    %354 = arith.subf %344, %353 : vector<8x32xf32>
    %355 = arith.mulf %354, %354 : vector<8x32xf32>
    %cst_168 = arith.constant dense<0.000000e+00> : vector<8xf32>
    %356 = vector.multi_reduction <add>, %355, %cst_168 [1] : vector<8x32xf32> to vector<8xf32>
    %357 = vector.shape_cast %356 : vector<8xf32> to vector<8x1xf32>
    %cst_169 = arith.constant 3.200000e+01 : f32
    %358 = vector.broadcast %cst_169 : f32 to vector<8x1xf32>
    %359 = arith.divf %357, %358 : vector<8x1xf32>
    %cst_170 = arith.constant 9.99999996E-13 : f32
    %360 = vector.broadcast %cst_170 : f32 to vector<8x1xf32>
    %361 = arith.addf %359, %360 : vector<8x1xf32>
    %362 = math.rsqrt %361 : vector<8x1xf32>
    %363 = vector.broadcast %362 : vector<8x1xf32> to vector<8x32xf32>
    %364 = arith.mulf %354, %363 : vector<8x32xf32>
    %365 = vector.broadcast %346 : vector<1x32xf32> to vector<8x32xf32>
    %366 = arith.mulf %364, %365 : vector<8x32xf32>
    %367 = vector.broadcast %348 : vector<1x32xf32> to vector<8x32xf32>
    %368 = arith.addf %366, %367 : vector<8x32xf32>
    %369 = vector.extract_strided_slice %368 {offsets = [0, 0], sizes = [1, 32], strides = [1, 1]} : vector<8x32xf32> to vector<1x32xf32>
    %370 = arith.truncf %369 : vector<1x32xf32> to vector<1x32xbf16>
    %c0_171 = arith.constant 0 : index
    %c0_172 = arith.constant 0 : index
    %371 = vector.load %arg19[%c0_171, %c0_172] : memref<128x32xbf16, #tpu.memory_space<vmem>>, vector<128x32xbf16>
    %cst_173 = arith.constant dense<0.000000e+00> : vector<1x128xf32>
    %372 = tpu.matmul %370, %371, %cst_173 {dimension_numbers = #tpu.dot_dimension_numbers<[1], [1], [0], [0], [0, 0, 1, 0], [], []>} : vector<1x32xbf16>, vector<128x32xbf16>, vector<1x128xf32> -> vector<1x128xf32>
    %c0_174 = arith.constant 0 : index
    %c0_175 = arith.constant 0 : index
    %c0_176 = arith.constant 0 : index
    %373 = vector.load %arg20[%c0_174, %c0_175, %c0_176] : memref<1x1x128xf32, #tpu.memory_space<vmem>>, vector<1x1x128xf32>
    %374 = vector.shape_cast %373 : vector<1x1x128xf32> to vector<1x128xf32>
    %375 = vector.shape_cast %372 : vector<1x128xf32> to vector<1x1x128xf32>
    tpu.vector_store %arg20[%c0_174, %c0_175, %c0_176], %375 {strides = array<i32>} : memref<1x1x128xf32, #tpu.memory_space<vmem>>, vector<1x1x128xf32>,
    return
  }
  func.func @transform_0(%arg0: i32, %arg1: memref<2x8xi32, #tpu.memory_space<smem>>) -> (i32, i32, i32) {
    %c0_i32 = arith.constant 0 : i32
    %c0_i32_0 = arith.constant 0 : i32
    %c0_i32_1 = arith.constant 0 : i32
    return %arg0, %c0_i32, %c0_i32_0 : i32, i32, i32
  }
  func.func @transform_1(%arg0: i32, %arg1: memref<2x8xi32, #tpu.memory_space<smem>>) -> (i32, i32) {
    %c0_i32 = arith.constant 0 : i32
    %c0_i32_0 = arith.constant 0 : i32
    %c0_i32_1 = arith.constant 0 : i32
    return %c0_i32, %c0_i32_0 : i32, i32
  }
  func.func @transform_2(%arg0: i32, %arg1: memref<2x8xi32, #tpu.memory_space<smem>>) -> (i32, i32) {
    %c0_i32 = arith.constant 0 : i32
    %c0_i32_0 = arith.constant 0 : i32
    %c0_i32_1 = arith.constant 0 : i32
    return %c0_i32, %c0_i32_0 : i32, i32
  }
  func.func @transform_3(%arg0: i32, %arg1: memref<2x8xi32, #tpu.memory_space<smem>>) -> (i32, i32) {
    %c0_i32 = arith.constant 0 : i32
    %c0_i32_0 = arith.constant 0 : i32
    %c0_i32_1 = arith.constant 0 : i32
    return %c0_i32, %c0_i32_0 : i32, i32
  }
  func.func @transform_4(%arg0: i32, %arg1: memref<2x8xi32, #tpu.memory_space<smem>>) -> (i32, i32) {
    %c0_i32 = arith.constant 0 : i32
    %c0_i32_0 = arith.constant 0 : i32
    %c0_i32_1 = arith.constant 0 : i32
    return %c0_i32, %c0_i32_0 : i32, i32
  }
  func.func @transform_5(%arg0: i32, %arg1: memref<2x8xi32, #tpu.memory_space<smem>>) -> (i32, i32, i32) {
    %c0_i32 = arith.constant 0 : i32
    %c0_i32_0 = arith.constant 0 : i32
    %c0_i32_1 = arith.constant 0 : i32
    %c0_i32_2 = arith.constant 0 : i32
    return %c0_i32, %c0_i32_0, %c0_i32_1 : i32, i32, i32
  }
  func.func @transform_6(%arg0: i32, %arg1: memref<2x8xi32, #tpu.memory_space<smem>>) -> (i32, i32, i32) {
    %c0_i32 = arith.constant 0 : i32
    %c0_i32_0 = arith.constant 0 : i32
    %c0_i32_1 = arith.constant 0 : i32
    %c0_i32_2 = arith.constant 0 : i32
    return %c0_i32, %c0_i32_0, %c0_i32_1 : i32, i32, i32
  }
  func.func @transform_7(%arg0: i32, %arg1: memref<2x8xi32, #tpu.memory_space<smem>>) -> (i32, i32, i32) {
    %c0_i32 = arith.constant 0 : i32
    %c0_i32_0 = arith.constant 0 : i32
    %c0_i32_1 = arith.constant 0 : i32
    %c0_i32_2 = arith.constant 0 : i32
    return %c0_i32, %c0_i32_0, %c0_i32_1 : i32, i32, i32
  }
  func.func @transform_8(%arg0: i32, %arg1: memref<2x8xi32, #tpu.memory_space<smem>>) -> (i32, i32, i32) {
    %c0_i32 = arith.constant 0 : i32
    %c0_i32_0 = arith.constant 0 : i32
    %c0_i32_1 = arith.constant 0 : i32
    %c0_i32_2 = arith.constant 0 : i32
    return %c0_i32, %c0_i32_0, %c0_i32_1 : i32, i32, i32
  }
  func.func @transform_9(%arg0: i32, %arg1: memref<2x8xi32, #tpu.memory_space<smem>>) -> (i32, i32, i32) {
    %c0_i32 = arith.constant 0 : i32
    %c0_i32_0 = arith.constant 0 : i32
    %c0_i32_1 = arith.constant 0 : i32
    %c0_i32_2 = arith.constant 0 : i32
    return %c0_i32, %c0_i32_0, %c0_i32_1 : i32, i32, i32
  }
  func.func @transform_10(%arg0: i32, %arg1: memref<2x8xi32, #tpu.memory_space<smem>>) -> (i32, i32, i32) {
    %c0_i32 = arith.constant 0 : i32
    %c0_i32_0 = arith.constant 0 : i32
    %c0_i32_1 = arith.constant 0 : i32
    %c0_i32_2 = arith.constant 0 : i32
    return %c0_i32, %c0_i32_0, %c0_i32_1 : i32, i32, i32
  }
  func.func @transform_11(%arg0: i32, %arg1: memref<2x8xi32, #tpu.memory_space<smem>>) -> (i32, i32, i32) {
    %c0_i32 = arith.constant 0 : i32
    %c0_i32_0 = arith.constant 0 : i32
    %c0_i32_1 = arith.constant 0 : i32
    %c0_i32_2 = arith.constant 0 : i32
    return %c0_i32, %c0_i32_0, %c0_i32_1 : i32, i32, i32
  }
  func.func @transform_12(%arg0: i32, %arg1: memref<2x8xi32, #tpu.memory_space<smem>>) -> (i32, i32, i32) {
    %c0_i32 = arith.constant 0 : i32
    %c0_i32_0 = arith.constant 0 : i32
    %c0_i32_1 = arith.constant 0 : i32
    %c0_i32_2 = arith.constant 0 : i32
    return %c0_i32, %c0_i32_0, %c0_i32_1 : i32, i32, i32
  }
  func.func @transform_13(%arg0: i32, %arg1: memref<2x8xi32, #tpu.memory_space<smem>>) -> (i32, i32, i32) {
    %c0_i32 = arith.constant 0 : i32
    %c0_i32_0 = arith.constant 0 : i32
    %c0_i32_1 = arith.constant 0 : i32
    %c0_i32_2 = arith.constant 0 : i32
    return %c0_i32, %c0_i32_0, %c0_i32_1 : i32, i32, i32
  }
  func.func @transform_14(%arg0: i32, %arg1: memref<2x8xi32, #tpu.memory_space<smem>>) -> (i32, i32, i32) {
    %c0_i32 = arith.constant 0 : i32
    %c0_i32_0 = arith.constant 0 : i32
    %c0_i32_1 = arith.constant 0 : i32
    %c0_i32_2 = arith.constant 0 : i32
    return %c0_i32, %c0_i32_0, %c0_i32_1 : i32, i32, i32
  }
  func.func @transform_15(%arg0: i32, %arg1: memref<2x8xi32, #tpu.memory_space<smem>>) -> (i32, i32, i32) {
    %c0_i32 = arith.constant 0 : i32
    %c0_i32_0 = arith.constant 0 : i32
    %c0_i32_1 = arith.constant 0 : i32
    %c0_i32_2 = arith.constant 0 : i32
    return %c0_i32, %c0_i32_0, %c0_i32_1 : i32, i32, i32
  }
  func.func @transform_16(%arg0: i32, %arg1: memref<2x8xi32, #tpu.memory_space<smem>>) -> (i32, i32, i32) {
    %c0_i32 = arith.constant 0 : i32
    %c0_i32_0 = arith.constant 0 : i32
    %c0_i32_1 = arith.constant 0 : i32
    %c0_i32_2 = arith.constant 0 : i32
    return %c0_i32, %c0_i32_0, %c0_i32_1 : i32, i32, i32
  }
  func.func @transform_17(%arg0: i32, %arg1: memref<2x8xi32, #tpu.memory_space<smem>>) -> (i32, i32) {
    %c0_i32 = arith.constant 0 : i32
    %c0_i32_0 = arith.constant 0 : i32
    %c0_i32_1 = arith.constant 0 : i32
    return %c0_i32, %c0_i32_0 : i32, i32
  }
  func.func @transform_18(%arg0: i32, %arg1: memref<2x8xi32, #tpu.memory_space<smem>>) -> (i32, i32, i32) {
    %c0_i32 = arith.constant 0 : i32
    %c0_i32_0 = arith.constant 0 : i32
    %c0_i32_1 = arith.constant 0 : i32
    return %arg0, %c0_i32, %c0_i32_0 : i32, i32, i32
  }
}

</mosaic_0001>

<bundles_post_ra>
// kernel: movie_expert_crs_forward.1
= control target key start
LH: loop header
LB: loop body
LE: loop exit
PB: predicated region body
PF: predicated region fallthrough
CT: control target
= control target key end

     0   :  { %s1967_s21 = smov [#allocation4]   ;;  %s2455_s0 = inlined_call_operand.vmem [shape: s32[2,8], index: 0, kind: input, shape index: {}, may-alias: {0,1}]   ;;  %s2456_s1 = inlined_call_operand.vmem [shape: s32[2,1,8], index: 1, kind: input, shape index: {}, may-alias: {0,1}]   ;;  %s2457_s2 = inlined_call_operand.vmem [shape: f32[100,32], index: 2, kind: input, shape index: {}]   ;;  %s2458_s3 = inlined_call_operand.vmem [shape: f32[8,32], index: 3, kind: input, shape index: {}]   ;;  %s2459_s4 = inlined_call_operand.vmem [shape: f32[1,32], index: 4, kind: input, shape index: {}]   ;;  %s2460_s5 = inlined_call_operand.vmem [shape: f32[1,32], index: 5, kind: input, shape index: {}]   ;;  %s2461_s6 = inlined_call_operand.vmem [shape: bf16[2,32,96], index: 6, kind: input, shape index: {}]   ;;  %s2462_s7 = inlined_call_operand.vmem [shape: f32[2,1,96], index: 7, kind: input, shape index: {}]   ;;  %s2463_s8 = inlined_call_operand.vmem [shape: bf16[2,32,32], index: 8, kind: input, shape index: {}]   ;;  %s2464_s9 = inlined_call_operand.vmem [shape: f32[2,1,32], index: 9, kind: input, shape index: {}]   ;;  %s2465_s10 = inlined_call_operand.vmem [shape: f32[2,1,32], index: 10, kind: input, shape index: {}]   ;;  %s2466_s11 = inlined_call_operand.vmem [shape: f32[2,1,32], index: 11, kind: input, shape index: {}]   ;;  %s2467_s12 = inlined_call_operand.vmem [shape: bf16[2,32,64], index: 12, kind: input, shape index: {}]   ;;  %s2468_s13 = inlined_call_operand.vmem [shape: f32[2,1,64], index: 13, kind: input, shape index: {}]   ;;  %s2469_s14 = inlined_call_operand.vmem [shape: bf16[2,64,32], index: 14, kind: input, shape index: {}]   ;;  %s2470_s15 = inlined_call_operand.vmem [shape: f32[2,1,32], index: 15, kind: input, shape index: {}]   ;;  %s2471_s16 = inlined_call_operand.vmem [shape: f32[2,1,32], index: 16, kind: input, shape index: {}]   ;;  %s2472_s17 = inlined_call_operand.vmem [shape: f32[2,1,32], index: 17, kind: input, shape index: {}]   ;;  %s2473_s18 = inlined_call_operand.vmem [shape: bf16[128,32], index: 18, kind: input, shape index: {}]   ;;  %s2474_s19 = inlined_call_operand.hbm [shape: f32[2,1,128], index: 19, kind: output, shape index: {}]  }
   0x1   :  { %2494 = sst [smem:[#allocation17_spill]] %s2455_s0 }
   0x2   :  { %2495 = sst [smem:[#allocation18_spill]] %s2456_s1 }
   0x3   :  { %2496 = sst [smem:[#allocation19_spill]] %s2457_s2 }
   0x4   :  { %2497 = sst [smem:[#allocation20_spill]] %s2458_s3 }
   0x5   :  { %2498 = sst [smem:[#allocation21_spill]] %s2466_s11 }
   0x6   :  { %2499 = sst [smem:[#allocation22_spill]] %s2468_s13 }
   0x7   :  { %2500 = sst [smem:[#allocation23_spill]] %s2469_s14 }
   0x8   :  { %2501 = sst [smem:[#allocation24_spill]] %s2470_s15 }
   0x9   :  { %2502 = sst [smem:[#allocation25_spill]] %s2471_s16 }
   0xa   :  { %2503 = sst [smem:[#allocation26_spill]] %s2472_s17 }
   0xb   :  { %2504 = sst [smem:[#allocation27_spill]] %s2473_s18 }
   0xc   :  { %2505 = sst [smem:[#allocation28_spill]] %s2474_s19 }
   0xd   :  { %s2506_s20 = sld [smem:[#allocation17_spill]] }
  0x13   :  { %s25_s13 = sshll.u32 %s2506_s20, 4  ;;  %s26_s13 = int_to_ptr.vmem [resolvable:$true] %s25_s13 }
  0x14   :  { %28 = dma.vmem_to_smem %s26_s13, 32, %s1967_s21, [#allocation3] }
  0x15   :  { %1945 = dma.done.wait [#allocation3], 32 }
  0x16   :  { %1946 = vsyncadd [#allocation3], 4294967264 }
  0x17   :  { %31 = sfence }
  0x18   :  { %32 = vsyncpa [#allocation6], 0 }
  0x19   :  { %34 = vsyncpa [#allocation6 + $0x1], 0  ;;  %s2076_s1 = smov 0   ;;  %s2078_s22 = smov 0  }
  0x1a   :  { %s2080_s2 = smov 0   ;;  %s2082_s23 = smov 0  }
  0x1b LB: > { %2507 = sst [smem:[#allocation9_spill]] %s1953_s1  ;;  %s2097_s13 = sadd.s32 4294967295, %s1965_s23   ;;  %s1965_s23 = sphi %s2082_s23, %s2537_s23   ;;  %s1961_s2 = sphi %s2080_s2, %s2540_s2   ;;  %s1957_s22 = sphi %s2078_s22, %s2539_s22   ;;  %s1953_s1 = sphi %s2076_s1, %s2538_s1  }
  0x1c   : > { %2508 = sst [smem:[#allocation10_spill]] %s1957_s22  ;;  %s1595_s24 = sadd.s32 4294967294, %s1965_s23  }
  0x1d   : > { %2509 = sst [smem:[#allocation11_spill]] %s1961_s2  ;;  %s2101_s25 = sadd.s32 1, %s1965_s23  }
  0x1e   : > { %2510 = sst [smem:[#allocation12_spill]] %s1965_s23  ;;  %s430_s3 = sadd.s32 1, %s1961_s2 }
  0x1f   : > { %2511 = sst [smem:[#allocation13_spill]] %s2101_s25  ;;  %s427_s26 = ssub.s32 %s1965_s23, %s2101_s25 }
  0x20   : > { %p440_p0 = scmp.ne.s32.totalorder %s1961_s2, %s1957_s22  ;;  %p428_p1 = scmp.eq.s32.totalorder %s427_s26, 0 }
  0x21   : > { %p441_p2 = scmp.eq.s32.totalorder %s2097_s13, 1  ;;  %p446_p3 = scmp.ne.s32.totalorder %s1957_s22, %s1953_s1 }
  0x22   : > { %p447_p4 = scmp.eq.s32.totalorder %s1595_s24, 1  ;;  %p1598_p7 = scmp.ge.s32.totalorder %s1965_s23, 1 }
  0x23   : > { %s2112_s27 = scalar_select %p428_p1, %s1961_s2, %s430_s3  }
  0x24   : > { %p2114_p5 = por %p441_p2, %p440_p0  ;;  %p2118_p6 = por %p447_p4, %p446_p3 }
  0x25   : > { %2512 = sst [smem:[#allocation14_spill]] %s2112_s27  ;;  %p522_p8 = scmp.lt.s32.totalorder %s1965_s23, 3 }
  0x26   : > { %s2513_s28 = scalar_select %p2114_p5, 1, 0 }
  0x27   : > { %s2515_s29 = scalar_select %p2118_p6, 1, 0 }
  0x28   : > { %2514 = sst [smem:[#allocation15_spill]] %s2513_s28  ;;  %p523_p9 = pnand %p1598_p7, %p522_p8 }
  0x29   : > { %2516 = sst [smem:[#allocation16_spill]] %s2515_s29  ;;  %s1599_s0 = sshll.u32 (!%p523_p9), %s2097_s13, 7 }
  0x2a   : > { %526 = sbr.rel (%p523_p9) target bundleno = 3963 (0xf7b), region = 92  ;;  %s578_s30 = sld [smem:[#allocation4 + %s1599_s0]] (!%p523_p9) }
  0x2b   : > { %s583_s20 = sadd.s32 (!%p523_p9), 1, %s1599_s0  ;;  %s588_s24 = sadd.s32 (!%p523_p9), 2, %s1599_s0 }
  0x2c   : > { %s584_s21 = sld [smem:[#allocation4 + %s583_s20]] (!%p523_p9)  ;;  %s593_s26 = sadd.s32 (!%p523_p9), 3, %s1599_s0 }
  0x2d   : > { %s589_s3 = sld [smem:[#allocation4 + %s588_s24]] (!%p523_p9)  ;;  %s598_s2 = sadd.s32 (!%p523_p9), 4, %s1599_s0 }
  0x2e   : > { %s594_s27 = sld [smem:[#allocation4 + %s593_s26]] (!%p523_p9)  ;;  %s603_s1 = sadd.s32 (!%p523_p9), 5, %s1599_s0 }
  0x2f   : > { %vm581_vm0 = vcmask 253952   ;;  %s599_s25 = sld [smem:[#allocation4 + %s598_s2]]  ;;  %s608_s28 = sadd.s32 6, %s1599_s0  ;;  %vm641_vm1 = vcmask 261120   ;;  %v1968_v12 = vmov 32.0   ;;  %v1762_v24 = vld [vmem:[%s2461_s6 + $0x8] sm:$0xff]  ;;  %v624_v26 = vlaneseq }
  0x30   : > { %s604_s19 = sld [smem:[#allocation4 + %s603_s1]]  ;;  %s613_s20 = sadd.s32 7, %s1599_s0  ;;  %1857 = vrcp.f32 %v1968_v12  ;;  %709 = vmatpush.bf16.msra.mxu0 %v1762_v24  ;;  %v1761_v25 = vld [vmem:[%s2461_s6] sm:$0xff]  ;;  %v1969_v31 = vmov 0.0   ;;  %vm751_vm11 = vcmask 64512   ;;  %vm812_vm12 = vcmask 1043456  }
  0x31   : > { %s2517_s23 = sld [smem:[#allocation19_spill]]  ;;  %v625_v29 = vand.u32 127, %v624_v26  ;;  %v1839_v41 = vld [vmem:[%s2459_s4] ss:$0 sm:$0xff]  ;;  %p573_p10 = scmp.lt.s32.totalorder %s2097_s13, 1 }
  0x32   : > { %s609_s16 = sld [smem:[#allocation4 + %s608_s28]]  ;;  %v1840_v44 = vld [vmem:[%s2460_s5] ss:$0 sm:$0xff] }
  0x33   : > { %s614_s1 = sld [smem:[#allocation4 + %s613_s20]]  ;;  %vm627_vm3 = vcmp.lt.s32.totalorder %v625_v29, 16  ;;  %vm631_vm4 = vcmp.ge.s32.totalorder %v625_v29, 16  ;;  %vm632_vm5 = vcmp.lt.s32.totalorder %v625_v29, 32  ;;  %v1841_v49 = vld [vmem:[%s2462_s7] ss:$0 sm:$0xff] }
  0x34   : > { %s2519_s26 = sld [smem:[#allocation20_spill]]  ;;  %710 = vmatpush.bf16.msra.mxu0 %v1761_v25  ;;  %v1600_v32 = vsel %vm627_vm3, 1.0, %v1969_v31  ;;  %vm633_vm6 = vmand %vm631_vm4, %vm632_vm5 }
  0x35   : > { %v2172_v33 = vsel %vm633_vm6, 1.0, %v1969_v31  ;;  %s2526_s24 = sld [smem:[#allocation25_spill]] }
  0x36   : > { %v1858_v13 = vpop.eup %1857  ;;  %v1834_v34 = vpack.i.bf16 %v2172_v33, %v1600_v32  ;;  %s2531_s22 = sld [smem:[#allocation10_spill]] }
  0x37   : > { %s2518_s18 = smov %s2517_s23  ;;  %s579_s17 = scalar_lea.vmem %s2517_s23, %s578_s30  ;;  %v646_v14 = vmul.f32 32.0, %v1858_v13  ;;  %vm650_vm2 = vweird.f32 %v1858_v13 }
  0x38   : > { %v580_v0 = vld [vmem:[%s579_s17] sm:$0x1]  ;;  %s585_s11 = scalar_lea.vmem %s2518_s18, %s584_s21  ;;  %s590_s2 = scalar_lea.vmem %s2518_s18, %s589_s3 }
  0x39   : > { %582 = vst.msk [vmem:[#allocation2] sm:$0x1] %vm581_vm0, %v580_v0  ;;  %v586_v1 = vld [vmem:[%s585_s11] sm:$0x1]  ;;  %s595_s17 = scalar_lea.vmem %s2518_s18, %s594_s27  ;;  %s600_s28 = scalar_lea.vmem %s2518_s18, %s599_s25  ;;  %v647_v15 = vsub.f32 1.0, %v646_v14 }
  0x3a   : > { %587 = vst.msk [vmem:[#allocation2 + $0x1] sm:$0x1] %vm581_vm0, %v586_v1  ;;  %v591_v2 = vld [vmem:[%s590_s2] sm:$0x1]  ;;  %s605_s0 = scalar_lea.vmem %s2518_s18, %s604_s19  ;;  %s610_s27 = scalar_lea.vmem %s2518_s18, %s609_s16 }
  0x3b   : > { %592 = vst.msk [vmem:[#allocation2 + $0x2] sm:$0x1] %vm581_vm0, %v591_v2  ;;  %v596_v3 = vld [vmem:[%s595_s17] sm:$0x1]  ;;  %s615_s20 = scalar_lea.vmem %s2518_s18, %s614_s1  ;;  %v648_v16 = vmul.f32 %v1858_v13, %v647_v15  ;;  %s1970_s23 = smov 32  }
  0x3c   : > { %597 = vst.msk [vmem:[#allocation2 + $0x3] sm:$0x1] %vm581_vm0, %v596_v3  ;;  %v601_v4 = vld [vmem:[%s600_s28] sm:$0x1]  ;;  %1835 = vrot.lane.b32.xlu1 %v1834_v34, %s1970_s23  ;;  %s1972_s30 = smov 64   ;;  %s2520_s3 = sld [smem:[#allocation18_spill]] }
  0x3d   : > { %602 = vst.msk [vmem:[#allocation2 + $0x4] sm:$0x1] %vm581_vm0, %v601_v4  ;;  %v606_v5 = vld [vmem:[%s605_s0] sm:$0x1]  ;;  %v649_v17 = vadd.f32 %v1858_v13, %v648_v16  ;;  %s1971_s0 = smov 96   ;;  %s2523_s23 = sld [smem:[#allocation22_spill]] }
  0x3e   : > { %607 = vst.msk [vmem:[#allocation2 + $0x5] sm:$0x1] %vm581_vm0, %v606_v5  ;;  %v611_v6 = vld [vmem:[%s610_s27] sm:$0x1]  ;;  %s574_s21 = scalar_select %p573_p10, %s2097_s13, 1 }
  0x3f   : > { %612 = vst.msk [vmem:[#allocation2 + $0x6] sm:$0x1] %vm581_vm0, %v611_v6  ;;  %v616_v7 = vld [vmem:[%s615_s20] sm:$0x1]  ;;  %v2161_v18 = vsel %vm650_vm2, %v1858_v13, %v649_v17  ;;  %s2525_s28 = sld [smem:[#allocation24_spill]]  ;;  %s571_s27 = sand.u32 1, %s2531_s22  }
  0x40   : > { %617 = vst.msk [vmem:[#allocation2 + $0x7] sm:$0x1] %vm581_vm0, %v616_v7  ;;  %v637_v8 = vld [vmem:[%s2519_s26] sm:$0xff]  ;;  %vm1004_vm0 = vcmask 523264   ;;  %s2527_s2 = sld [smem:[#allocation26_spill]]  ;;  %s572_s16 = scalar_lea.vmem [#allocation5], %s571_s27 }
  0x41   : > { %s2529_s1 = sld [smem:[#allocation27_spill]] }
  0x42   : > { %s575_s20 = scalar_lea.vmem %s2520_s3, %s574_s21  ;;  %s2521_s21 = sld [smem:[#allocation21_spill]] }
  0x43   : > { %v618_v1 = vld [vmem:[%s575_s20] sm:$0x1]  ;;  %s2522_s3 = sld [smem:[#allocation23_spill]]  ;;  %s2524_s17 = smov %s2523_s23 }
  0x44   : > { %vm619_vm10 = vcmp.eq.s32.totalorder %v618_v1, 0  ;;  %s2533_s19 = sld [smem:[#allocation28_spill]] }
  0x45   : > { %v620_v2 = vsel %vm619_vm10, -1e+09, %v1969_v31 }
  0x46   : > { %v2214_v3 = vperm.slane %v620_v2, 0  ;;  %s2528_s14 = smov %s2527_s2 }
  0x47   : > { %v636_v9 = vld [vmem:[#allocation2] sm:$0xff] }
  0x48   : > { %v638_v10 = vadd.f32 %v637_v8, %v636_v9 }
  0x4a   : > { %v642_v11 = vsel %vm641_vm1, %v638_v10, 0.0  ;;  %s1531_s26 = scalar_lea.hbm %s2533_s19, %s2097_s13  ;;  %s1921_s25 = scalar_lea.hbm %s2533_s19, 2 }
  0x4b   : > { %643 = vadd.xlane.f32.xlu0 %v642_v11 }
  0xae   : > { %v2186_v48 = vpop.permute.xlu1 %1835 }
  0xaf   : > { %v1838_v50 = vunpack.i.h.bf16 %v2186_v48  ;;  %v1837_v51 = vunpack.i.l.bf16 %v2186_v48 }
  0xbe   : > { %v644_v19 = vpop.xlane.xlu0 %643 }
  0xbf   : > { %v652_v20 = vmul.f32 %v2161_v18, %v644_v19 }
  0xc1   : > { %v653_v21 = vsub.f32 %v638_v10, %v652_v20 }
  0xc3   : > { %v654_v22 = vmul.f32 %v653_v21, %v653_v21 }
  0xc5   : > { %v655_v23 = vsel %vm641_vm1, %v654_v22, 0.0 }
  0xc6   : > { %656 = vadd.xlane.f32.xlu0 %v655_v23 }
 0x139   : > { %v657_v27 = vpop.xlane.xlu0 %656 }
 0x13a   : > { %v658_v28 = vmul.f32 %v657_v27, %v2161_v18 }
 0x13c   : > { %v659_v30 = vadd.f32 1e-12, %v658_v28 }
 0x13e   : > { %1859 = vrsqrt.f32 %v659_v30  ;;  %vm666_vm8 = vweird.f32 %v659_v30 }
 0x144   : > { %v1860_v35 = vpop.eup %1859 }
 0x145   : > { %v661_v36 = vmul.f32 %v1860_v35, %v659_v30  ;;  %vm667_vm7 = vweird.f32 %v1860_v35 }
 0x146   : > { %vm668_vm9 = vmor %vm666_vm8, %vm667_vm7 }
 0x147   : > { %v662_v37 = vmul.f32 %v1860_v35, %v661_v36 }
 0x149   : > { %v663_v38 = vmul.f32 0.5, %v662_v37 }
 0x14b   : > { %v664_v39 = vsub.f32 1.5, %v663_v38 }
 0x14d   : > { %v665_v40 = vmul.f32 %v1860_v35, %v664_v39 }
 0x14f   : > { %v669_v42 = vsel %vm668_vm9, %v1860_v35, %v665_v40 }
 0x150   : > { %v670_v43 = vmul.f32 %v669_v42, %v653_v21  ;;  %v1763_v42 = vld [vmem:[%s2463_s8] sm:$0xff] }
 0x152   : > { %v674_v45 = vmul.f32 %v1839_v41, %v670_v43  ;;  %v1764_v41 = vld [vmem:[%s2463_s8 + $0x8] sm:$0xff] }
 0x154   : > { %v2181_v46 = vadd.f32 %v1840_v44, %v674_v45 }
 0x156   : > { %v684_v47 = vpack.c.bf16 %v2181_v46, %v2181_v46 }
 0x158   : > { %1610 = vmatmul.msk.bf16.vlgmr.msra.gmra.mxu0 %vm641_vm1, %v684_v47 }
 0x1d5   : > { %v712_v52 = vpop.f32.mrf.mxu0 }
 0x1d6   : > { %v2193_v53 = vadd.f32 %v1841_v49, %v712_v52 }
 0x1d8   : > { %v768_v54 = vmul.f32 %v1838_v50, %v2193_v53  ;;  %v722_v55 = vmul.f32 %v1837_v51, %v2193_v53  ;;  %v716_v61 = vmul.f32 0.25, %v2193_v53 }
 0x1da   : > { %v769_v56 = vpack.c.bf16 %v768_v54, %v768_v54  ;;  %v723_v57 = vpack.c.bf16 %v722_v55, %v722_v55  ;;  %v717_v62 = vpack.c.bf16 %v716_v61, %v716_v61 }
 0x1dc   : > { %776 = vrot.lane.b32.xlu2 %v769_v56, %s1971_s0  ;;  %730 = vrot.lane.b32.xlu1 %v723_v57, %s1971_s0 }
 0x1dd   : > { %v714_v58 = vpop.f32.mrf.mxu0 }
 0x1e4   : > { %724 = vrot.lane.b32.xlu1 %v1600_v32, %s1972_s30 }
 0x236   : > { %v777_v59 = vpop.permute.xlu2 %776 }
 0x237   : > { %v779_v60 = vsel %vm641_vm1, %v777_v59, 0 }
 0x238   : > { %788 = vmatpush.bf16.xpose.msra.mxu2 %v779_v60 }
 0x23f   : > { %1612 = vmatmul.msk.bf16.vlgmr.msra.gmra.mxu2 %vm641_vm1, %v717_v62 }
 0x24e   : > { %v731_v63 = vpop.permute.xlu1 %730 }
 0x24f   : > { %v736_v0 = vsel %vm641_vm1, %v731_v63, 0 }
 0x250   : > { %745 = vmatpush.bf16.xpose.msra.mxu1 %v736_v0  ;;  %v1766_v0 = vld [vmem:[%s2467_s12 + $0x8] sm:$0xff] }
 0x256   : > { %v2222_v12 = vpop.permute.xlu1 %724 }
 0x257   : > { %1611 = vmatmul.msk.bf16.vlgmr.msra.gmra.mxu1 %vm641_vm1, %v717_v62  ;;  %v727_v13 = vmul.f32 %v2222_v12, %v2193_v53 }
 0x258   : > { %951 = vmatpush.bf16.msrb.mxu1 %v1766_v0 }
 0x259   : > { %v728_v14 = vpack.c.bf16 %v727_v13, %v727_v13 }
 0x2c2   : > { %v790_v4 = vpop.f32.mrf.mxu2 }
 0x2c3   : > { %v791_v5 = vadd.f32 %v790_v4, %v2214_v3 }
 0x2c5   : > { %v794_v6 = vsel %vm751_vm11, %v791_v5, -inf }
 0x2c6   : > { %795 = vmax.xlane.f32.xlu0 %v794_v6 }
 0x2ca   : > { %v792_v7 = vpop.f32.mrf.mxu2 }
 0x2d4   : > { %v747_v8 = vpop.f32.mrf.mxu1 }
 0x2d5   : > { %v748_v9 = vadd.f32 %v747_v8, %v2214_v3 }
 0x2d7   : > { %v752_v10 = vsel %vm751_vm11, %v748_v9, -inf }
 0x2d8   : > { %753 = vmax.xlane.f32.xlu2 %v752_v10 }
 0x2da   : > { %770 = vrot.lane.b32.xlu0 %v2172_v33, %s1972_s30 }
 0x2dc   : > { %v749_v11 = vpop.f32.mrf.mxu1 }
 0x2dd   : > { %v1843_v11 = vld [vmem:[%s2465_s10] ss:$0 sm:$0xff] }
 0x2f0   : > { %830 = vrot.lane.b32.xlu2 %v728_v14, %s1972_s30 }
 0x339   : > { %v796_v15 = vpop.xlane.xlu0 %795 }
 0x33a   : > { %v797_v16 = vsub.f32 %v791_v5, %v796_v15  ;;  %v1844_v15 = vld [vmem:[%s2521_s21] ss:$0 sm:$0xff] }
 0x33c   : > { %v798_v17 = vmul.f32 1.442695, %v797_v16 }
 0x33e   : > { %1861 = vpow2.f32 %v798_v17 }
 0x344   : > { %v1862_v19 = vpop.eup %1861 }
 0x345   : > { %v800_v20 = vsel %vm751_vm11, %v1862_v19, 0.0 }
 0x346   : > { %801 = vadd.xlane.f32.xlu0 %v800_v20  ;;  %v1770_v20 = vld [vmem:[%s2522_s3 + $0x18] sm:$0xff] }
 0x34b   : > { %v754_v21 = vpop.xlane.xlu2 %753 }
 0x34c   : > { %v755_v22 = vsub.f32 %v748_v9, %v754_v21  ;;  %v2230_v28 = vpop.permute.xlu0 %770  ;;  %v1769_v21 = vld [vmem:[%s2522_s3 + $0x10] sm:$0xff] }
 0x34d   : > { %v773_v29 = vmul.f32 %v2230_v28, %v2193_v53  ;;  %v1842_v53 = vld [vmem:[%s2464_s9] ss:$0 sm:$0xff] }
 0x34e   : > { %v756_v23 = vmul.f32 1.442695, %v755_v22  ;;  %v1768_v22 = vld [vmem:[%s2522_s3 + $0x8] sm:$0xff] }
 0x34f   : > { %v774_v30 = vpack.c.bf16 %v773_v29, %v773_v29 }
 0x350   : > { %1863 = vpow2.f32 %v756_v23  ;;  %v1767_v23 = vld [vmem:[%s2522_s3] sm:$0xff] }
 0x353   : > { %v831_v24 = vpop.permute.xlu2 %830 }
 0x354   : > { %v836_v25 = vsel %vm812_vm12, %v831_v24, 0  ;;  %v1845_v24 = vld [vmem:[%s2523_s23] ss:$0 sm:$0xff] }
 0x355   : > { %845 = vmatpush.bf16.msrb.mxu2 %v836_v25 }
 0x356   : > { %v1864_v26 = vpop.eup %1863 }
 0x357   : > { %v758_v27 = vsel %vm751_vm11, %v1864_v26, 0.0 }
 0x358   : > { %759 = vadd.xlane.f32.xlu1 %v758_v27 }
 0x359   : > { %1012 = vmatpush.bf16.msra.mxu2 %v1770_v20 }
 0x35d   : > { %1013 = vmatpush.bf16.msra.mxu2 %v1769_v21 }
 0x361   : > { %1014 = vmatpush.bf16.msra.mxu2 %v1768_v22 }
 0x365   : > { %1015 = vmatpush.bf16.msra.mxu2 %v1767_v23 }
 0x371   : > { %807 = vrot.lane.b32.xlu1 %v774_v30, %s1972_s30 }
 0x3b9   : > { %v802_v35 = vpop.xlane.xlu0 %801 }
 0x3cb   : > { %v760_v31 = vpop.xlane.xlu1 %759 }
 0x3cc   : > { %1865 = vrcp.f32 %v760_v31 }
 0x3cd   : > { %1867 = vrcp.f32 %v802_v35 }
 0x3d2   : > { %v1866_v32 = vpop.eup %1865 }
 0x3d3   : > { %v762_v33 = vmul.f32 %v1866_v32, %v1864_v26  ;;  %v1868_v36 = vpop.eup %1867 }
 0x3d4   : > { %v804_v37 = vmul.f32 %v1868_v36, %v1862_v19 }
 0x3d5   : > { %v763_v34 = vpack.c.bf16 %v762_v33, %v762_v33 }
 0x3d6   : > { %v805_v40 = vpack.c.bf16 %v804_v37, %v804_v37 }
 0x3d7   : > { %1614 = vmatmul.msk.bf16.vlgmr.msrb.gmra.mxu2 %vm751_vm11, %v763_v34 }
 0x3e3   : > { %v808_v38 = vpop.permute.xlu1 %807 }
 0x3e4   : > { %v814_v39 = vsel %vm812_vm12, %v808_v38, 0 }
 0x3e5   : > { %823 = vmatpush.bf16.msrb.mxu0 %v814_v39  ;;  %v1846_v39 = vld [vmem:[%s2525_s28] ss:$0 sm:$0xff] }
 0x3e8   : > { %1613 = vmatmul.msk.bf16.vlgmr.msrb.gmra.mxu0 %vm751_vm11, %v805_v40 }
 0x3e9   : > { %881 = vmatpush.bf16.msra.mxu0 %v1764_v41 }
 0x3ed   : > { %882 = vmatpush.bf16.msra.mxu0 %v1763_v42 }
 0x45a   : > { %v847_v43 = vpop.f32.mrf.mxu2 }
 0x462   : > { %v849_v44 = vpop.f32.mrf.mxu2 }
 0x465   : > { %v825_v45 = vpop.f32.mrf.mxu0 }
 0x466   : > { %v848_v47 = vadd.f32 %v847_v43, %v825_v45 }
 0x468   : > { %v856_v49 = vpack.c.bf16 %v848_v47, %v848_v47 }
 0x46a   : > { %1623 = vmatmul.msk.bf16.vlgmr.msra.gmra.mxu0 %vm641_vm1, %v856_v49 }
 0x46d   : > { %v827_v52 = vpop.f32.mrf.mxu0 }
 0x4e7   : > { %v884_v54 = vpop.f32.mrf.mxu0 }
 0x4e8   : > { %v885_v55 = vadd.f32 %v1842_v53, %v884_v54  ;;  %v1772_v54 = vld [vmem:[%s2461_s6 + $0x18] sm:$0xff] }
 0x4ea   : > { %v888_v56 = vadd.f32 %v885_v55, %v2181_v46  ;;  %v1765_v46 = vld [vmem:[%s2467_s12] sm:$0xff]  ;;  %v1771_v55 = vld [vmem:[%s2461_s6 + $0x10] sm:$0xff] }
 0x4eb   : > { %952 = vmatpush.bf16.msrb.mxu1 %v1765_v46  ;;  %v1847_v46 = vld [vmem:[%s2526_s24] ss:$0 sm:$0xff] }
 0x4ec   : > { %v891_v57 = vsel %vm641_vm1, %v888_v56, 0.0 }
 0x4ed   : > { %892 = vadd.xlane.f32.xlu2 %v891_v57 }
 0x4ef   : > { %v886_v58 = vpop.f32.mrf.mxu0  ;;  %1086 = vmatpush.bf16.msra.mxu1 %v1772_v54 }
 0x4f3   : > { %1087 = vmatpush.bf16.msra.mxu1 %v1771_v55 }
 0x560   : > { %v893_v59 = vpop.xlane.xlu2 %892 }
 0x561   : > { %v894_v60 = vmul.f32 %v893_v59, %v2161_v18 }
 0x563   : > { %v895_v61 = vsub.f32 %v888_v56, %v894_v60 }
 0x565   : > { %v896_v62 = vmul.f32 %v895_v61, %v895_v61 }
 0x567   : > { %v897_v63 = vsel %vm641_vm1, %v896_v62, 0.0 }
 0x568   : > { %898 = vadd.xlane.f32.xlu0 %v897_v63 }
 0x5db   : > { %v899_v1 = vpop.xlane.xlu0 %898 }
 0x5dc   : > { %v900_v2 = vmul.f32 %v899_v1, %v2161_v18 }
 0x5de   : > { %v901_v4 = vadd.f32 1e-12, %v900_v2  ;;  %v1848_v2 = vld [vmem:[%s2527_s2] ss:$0 sm:$0xff]  ;;  %s1533_s2 = sshll.u32 %s572_s16, 4  ;;  %s1534_s2 = int_to_ptr.vmem [resolvable:$true] %s1533_s2 }
 0x5e0   : > { %1869 = vrsqrt.f32 %v901_v4  ;;  %vm908_vm14 = vweird.f32 %v901_v4 }
 0x5e6   : > { %v1870_v5 = vpop.eup %1869 }
 0x5e7   : > { %v903_v6 = vmul.f32 %v1870_v5, %v901_v4  ;;  %vm909_vm13 = vweird.f32 %v1870_v5 }
 0x5e8   : > { %vm910_vm15 = vmor %vm908_vm14, %vm909_vm13 }
 0x5e9   : > { %v904_v7 = vmul.f32 %v1870_v5, %v903_v6 }
 0x5eb   : > { %v905_v8 = vmul.f32 0.5, %v904_v7 }
 0x5ed   : > { %v906_v9 = vsub.f32 1.5, %v905_v8  ;;  %v1849_v8 = vld [vmem:[%s2462_s7 + $0x1] ss:$0 sm:$0xff] }
 0x5ef   : > { %v907_v10 = vmul.f32 %v1870_v5, %v906_v9 }
 0x5f1   : > { %v911_v13 = vsel %vm910_vm15, %v1870_v5, %v907_v10 }
 0x5f2   : > { %v912_v14 = vmul.f32 %v911_v13, %v895_v61 }
 0x5f4   : > { %v916_v16 = vmul.f32 %v1843_v11, %v912_v14 }
 0x5f6   : > { %v920_v17 = vadd.f32 %v1844_v15, %v916_v16 }
 0x5f8   : > { %v926_v19 = vpack.c.bf16 %v920_v17, %v920_v17 }
 0x5fa   : > { %1632 = vmatmul.msk.bf16.vlgmr.msrb.gmra.mxu1 %vm641_vm1, %v926_v19 }
 0x677   : > { %v954_v25 = vpop.f32.mrf.mxu1 }
 0x678   : > { %v955_v26 = vadd.f32 %v1845_v24, %v954_v25 }
 0x67a   : > { %v958_v27 = vmul.f32 %v955_v26, %v955_v26 }
 0x67c   : > { %v959_v29 = vmul.f32 %v958_v27, %v955_v26 }
 0x67e   : > { %v960_v30 = vmul.f32 0.044715, %v959_v29 }
 0x67f   : > { %v956_v31 = vpop.f32.mrf.mxu1 }
 0x680   : > { %v961_v32 = vadd.f32 %v960_v30, %v955_v26 }
 0x682   : > { %v962_v33 = vmul.f32 0.7978846, %v961_v32 }
 0x684   : > { %1871 = vtanh.f32 %v962_v33 }
 0x68a   : > { %v1872_v34 = vpop.eup %1871 }
 0x68b   : > { %v964_v35 = vadd.f32 1.0, %v1872_v34 }
 0x68d   : > { %v965_v36 = vmul.f32 0.5, %v964_v35 }
 0x68f   : > { %v966_v37 = vmul.f32 %v965_v36, %v955_v26 }
 0x691   : > { %v976_v38 = vpack.c.bf16 %v966_v37, %v966_v37 }
 0x693   : > { %1649 = vmatmul.msk.bf16.vlgmr.msra.gmra.mxu2 %vm1004_vm0, %v976_v38 }
 0x716   : > { %v1017_v40 = vpop.f32.mrf.mxu2 }
 0x717   : > { %v1018_v41 = vadd.f32 %v1846_v39, %v1017_v40 }
 0x719   : > { %v1021_v42 = vadd.f32 %v1018_v41, %v920_v17 }
 0x71b   : > { %v1024_v43 = vsel %vm641_vm1, %v1021_v42, 0.0 }
 0x71c   : > { %1025 = vadd.xlane.f32.xlu1 %v1024_v43 }
 0x71e   : > { %v1019_v44 = vpop.f32.mrf.mxu2 }
 0x78f   : > { %v1026_v45 = vpop.xlane.xlu1 %1025 }
 0x790   : > { %v1027_v47 = vmul.f32 %v1026_v45, %v2161_v18 }
 0x792   : > { %v1028_v49 = vsub.f32 %v1021_v42, %v1027_v47 }
 0x794   : > { %v1029_v52 = vmul.f32 %v1028_v49, %v1028_v49 }
 0x796   : > { %v1030_v53 = vsel %vm641_vm1, %v1029_v52, 0.0 }
 0x797   : > { %1031 = vadd.xlane.f32.xlu0 %v1030_v53 }
 0x80a   : > { %v1032_v56 = vpop.xlane.xlu0 %1031 }
 0x80b   : > { %v1033_v57 = vmul.f32 %v1032_v56, %v2161_v18 }
 0x80d   : > { %v1034_v58 = vadd.f32 1e-12, %v1033_v57  ;;  %v1774_v57 = vld [vmem:[%s2463_s8 + $0x18] sm:$0xff] }
 0x80f   : > { %1873 = vrsqrt.f32 %v1034_v58  ;;  %vm1041_vm3 = vweird.f32 %v1034_v58 }
 0x815   : > { %v1874_v59 = vpop.eup %1873 }
 0x816   : > { %v1036_v60 = vmul.f32 %v1874_v59, %v1034_v58  ;;  %vm1042_vm2 = vweird.f32 %v1874_v59  ;;  %v1773_v58 = vld [vmem:[%s2463_s8 + $0x10] sm:$0xff] }
 0x817   : > { %vm1043_vm4 = vmor %vm1041_vm3, %vm1042_vm2 }
 0x818   : > { %v1037_v61 = vmul.f32 %v1874_v59, %v1036_v60 }
 0x81a   : > { %v1038_v62 = vmul.f32 0.5, %v1037_v61 }
 0x81c   : > { %v1039_v63 = vsub.f32 1.5, %v1038_v62 }
 0x81e   : > { %v1040_v0 = vmul.f32 %v1874_v59, %v1039_v63 }
 0x820   : > { %v1044_v1 = vsel %vm1043_vm4, %v1874_v59, %v1040_v0 }
 0x821   : > { %v1045_v4 = vmul.f32 %v1044_v1, %v1028_v49 }
 0x823   : > { %v1049_v5 = vmul.f32 %v1847_v46, %v1045_v4  ;;  %v1850_v46 = vld [vmem:[%s2464_s9 + $0x1] ss:$0 sm:$0xff] }
 0x825   : > { %v2301_v6 = vadd.f32 %v1848_v2, %v1049_v5 }
 0x827   : > { %v1061_v7 = vpack.c.bf16 %v2301_v6, %v2301_v6 }
 0x829   : > { %1663 = vmatmul.msk.bf16.vlgmr.msra.gmra.mxu1 %vm641_vm1, %v1061_v7 }
 0x8a6   : > { %v1089_v9 = vpop.f32.mrf.mxu1 }
 0x8a7   : > { %v1090_v10 = vadd.f32 %v1849_v8, %v1089_v9 }
 0x8a9   : > { %v1133_v11 = vmul.f32 %v1838_v50, %v1090_v10  ;;  %v1095_v13 = vmul.f32 %v1837_v51, %v1090_v10  ;;  %v1093_v20 = vmul.f32 0.25, %v1090_v10  ;;  %v1097_v30 = vmul.f32 %v1090_v10, %v2222_v12 }
 0x8aa   : > { %v1135_v39 = vmul.f32 %v1090_v10, %v2230_v28 }
 0x8ab   : > { %v1134_v14 = vpack.c.bf16 %v1133_v11, %v1133_v11  ;;  %v1096_v15 = vpack.c.bf16 %v1095_v13, %v1095_v13  ;;  %v1094_v21 = vpack.c.bf16 %v1093_v20, %v1093_v20  ;;  %v1098_v31 = vpack.c.bf16 %v1097_v30, %v1097_v30  ;;  %v1780_v30 = vld [vmem:[%s2522_s3 + $0x38] sm:$0xff] }
 0x8ac   : > { %v1136_v41 = vpack.c.bf16 %v1135_v39, %v1135_v39 }
 0x8ad   : > { %1138 = vrot.lane.b32.xlu2 %v1134_v14, %s1971_s0  ;;  %1100 = vrot.lane.b32.xlu0 %v1096_v15, %s1971_s0  ;;  %v1776_v14 = vld [vmem:[%s2467_s12 + $0x18] sm:$0xff]  ;;  %s2530_s0 = smov %s2529_s1 }
 0x8ae   : > { %v1091_v16 = vpop.f32.mrf.mxu1 }
 0x907   : > { %v1139_v17 = vpop.permute.xlu2 %1138 }
 0x908   : > { %v1141_v19 = vsel %vm641_vm1, %v1139_v17, 0 }
 0x909   : > { %1150 = vmatpush.bf16.xpose.msrb.mxu1 %v1141_v19 }
 0x910   : > { %1665 = vmatmul.msk.bf16.vlgmr.msrb.gmra.mxu1 %vm641_vm1, %v1094_v21 }
 0x911   : > { %1318 = vmatpush.bf16.msra.mxu1 %v1776_v14 }
 0x91f   : > { %v1101_v22 = vpop.permute.xlu0 %1100 }
 0x920   : > { %v1106_v50 = vsel %vm641_vm1, %v1101_v22, 0 }
 0x921   : > { %1115 = vmatpush.bf16.xpose.msrb.mxu0 %v1106_v50 }
 0x928   : > { %1664 = vmatmul.msk.bf16.vlgmr.msrb.gmra.mxu0 %vm641_vm1, %v1094_v21 }
 0x929   : > { %1244 = vmatpush.bf16.msra.mxu0 %v1774_v57  ;;  %v1787_v57 = vld [vmem:[%s2530_s0 + $0x30] sm:$0xff] }
 0x92d   : > { %1245 = vmatpush.bf16.msra.mxu0 %v1773_v58  ;;  %v1503_v58 = vsel %vm641_vm1, %v1787_v57, 0 }
 0x98d   : > { %v1152_v48 = vpop.f32.mrf.mxu1 }
 0x98e   : > { %v1153_v51 = vadd.f32 %v1152_v48, %v2214_v3 }
 0x990   : > { %v1156_v23 = vsel %vm751_vm11, %v1153_v51, -inf }
 0x991   : > { %1157 = vmax.xlane.f32.xlu1 %v1156_v23 }
 0x995   : > { %v1154_v24 = vpop.f32.mrf.mxu1 }
 0x996   : > { %v1852_v24 = vld [vmem:[%s2521_s21 + $0x1] ss:$0 sm:$0xff] }
 0x9a5   : > { %v1117_v25 = vpop.f32.mrf.mxu0 }
 0x9a6   : > { %v1118_v26 = vadd.f32 %v1117_v25, %v2214_v3 }
 0x9a8   : > { %v1121_v27 = vsel %vm751_vm11, %v1118_v26, -inf }
 0x9a9   : > { %1122 = vmax.xlane.f32.xlu0 %v1121_v27 }
 0x9ad   : > { %v1119_v29 = vpop.f32.mrf.mxu0 }
 0x9bd   : > { %1191 = vrot.lane.b32.xlu0 %v1098_v31, %s1972_s30  ;;  %v1779_v31 = vld [vmem:[%s2522_s3 + $0x30] sm:$0xff] }
 0xa04   : > { %v1158_v32 = vpop.xlane.xlu1 %1157 }
 0xa05   : > { %v1159_v33 = vsub.f32 %v1153_v51, %v1158_v32  ;;  %v1851_v51 = vld [vmem:[%s2465_s10 + $0x1] ss:$0 sm:$0xff]  ;;  %v1778_v32 = vld [vmem:[%s2522_s3 + $0x28] sm:$0xff] }
 0xa07   : > { %v1160_v34 = vmul.f32 1.442695, %v1159_v33  ;;  %v1777_v33 = vld [vmem:[%s2522_s3 + $0x20] sm:$0xff] }
 0xa09   : > { %1875 = vpow2.f32 %v1160_v34  ;;  %v1853_v34 = vld [vmem:[%s2524_s17 + $0x1] ss:$0 sm:$0xff] }
 0xa0f   : > { %v1876_v35 = vpop.eup %1875 }
 0xa10   : > { %v1162_v36 = vsel %vm751_vm11, %v1876_v35, 0.0 }
 0xa11   : > { %1163 = vadd.xlane.f32.xlu1 %v1162_v36 }
 0xa1c   : > { %v1123_v37 = vpop.xlane.xlu0 %1122 }
 0xa1d   : > { %v1124_v38 = vsub.f32 %v1118_v26, %v1123_v37 }
 0xa1f   : > { %v1125_v3 = vmul.f32 1.442695, %v1124_v38 }
 0xa21   : > { %1877 = vpow2.f32 %v1125_v3 }
 0xa27   : > { %v1878_v40 = vpop.eup %1877 }
 0xa28   : > { %v1127_v12 = vsel %vm751_vm11, %v1878_v40, 0.0 }
 0xa29   : > { %1128 = vadd.xlane.f32.xlu2 %v1127_v12 }
 0xa2a   : > { %1169 = vrot.lane.b32.xlu1 %v1136_v41, %s1972_s30  ;;  %s1523_s30 = scalar_lea.sflag [#allocation6], %s571_s27 }
 0xa2f   : > { %v1192_v42 = vpop.permute.xlu0 %1191 }
 0xa30   : > { %v1197_v43 = vsel %vm812_vm12, %v1192_v42, 0 }
 0xa31   : > { %1206 = vmatpush.bf16.msra.mxu3 %v1197_v43 }
 0xa84   : > { %v1164_v44 = vpop.xlane.xlu1 %1163 }
 0xa85   : > { %1879 = vrcp.f32 %v1164_v44 }
 0xa8b   : > { %v1880_v45 = vpop.eup %1879 }
 0xa8c   : > { %v1166_v47 = vmul.f32 %v1880_v45, %v1876_v35 }
 0xa8e   : > { %v1167_v28 = vpack.c.bf16 %v1166_v47, %v1166_v47  ;;  %v1854_v47 = vld [vmem:[%s2525_s28 + $0x1] ss:$0 sm:$0xff] }
 0xa9c   : > { %v1170_v49 = vpop.permute.xlu1 %1169  ;;  %v1129_v52 = vpop.xlane.xlu2 %1128 }
 0xa9d   : > { %v1175_v53 = vsel %vm812_vm12, %v1170_v49, 0  ;;  %1881 = vrcp.f32 %v1129_v52 }
 0xa9e   : > { %1184 = vmatpush.bf16.msrb.mxu2 %v1175_v53 }
 0xaa1   : > { %1666 = vmatmul.msk.bf16.vlgmr.msrb.gmra.mxu2 %vm751_vm11, %v1167_v28 }
 0xaa2   : > { %1380 = vmatpush.bf16.msra.mxu2 %v1780_v30 }
 0xaa3   : > { %v1882_v54 = vpop.eup %1881 }
 0xaa4   : > { %v1131_v55 = vmul.f32 %v1882_v54, %v1878_v40 }
 0xaa6   : > { %v1132_v56 = vpack.c.bf16 %v1131_v55, %v1131_v55  ;;  %1381 = vmatpush.bf16.msra.mxu2 %v1779_v31  ;;  %v1788_v55 = vld [vmem:[%s2529_s1 + $0x38] sm:$0xff]  ;;  %s1535_s1 = sshll.u32 %s1531_s26, 4  ;;  %s1536_s1 = int_to_ptr.hbm [resolvable:$true] %s1535_s1 }
 0xaa7   : > { %s1915_s23 = sshra.s32 %s1536_s1, 4  ;;  %s1916_s23 = int_to_ptr.hbm [resolvable:$true] %s1915_s23 }
 0xaa8   : > { %1667 = vmatmul.msk.bf16.vlgmr.msra.gmra.mxu3 %vm751_vm11, %v1132_v56  ;;  %v1506_v56 = vsel %vm641_vm1, %v1788_v55, 0  ;;  %s1917_s15 = scalar_lea.hbm %s1916_s23, 1  ;;  %p1922_p0 = scmp.lt.s32.totalorder %s1916_s23, %s2533_s19 }
 0xaa9   : > { %1508 = vmatpush.bf16.xpose.msrb.mxu3 %v1506_v56  ;;  %p1918_p11 = scmp.ne.s32.totalorder %s1916_s23, %s1917_s15  ;;  %p1923_p1 = scmp.lt.s32.totalorder %s1921_s25, %s1917_s15 }
 0xaaa   : > { %1382 = vmatpush.bf16.msra.mxu2 %v1778_v32 }
 0xaab   : > { %p1919_p12 = pnand %p1918_p11, %p2114_p5  ;;  %p1924_p2 = por %p1923_p1, %p1922_p0 }
 0xaad   : > { %p1920_p13 = pneg %p1919_p12 }
 0xaae   : > { %1383 = vmatpush.bf16.msra.mxu2 %v1777_v33 }
 0xaaf   : > { %p1925_p3 = pnand %p1924_p2, %p1920_p13 }
 0xab1   : > { %1509 = vmatpush.bf16.xpose.msrb.mxu3 %v1503_v58 }
 0xb24   : > { %v1186_v59 = vpop.f32.mrf.mxu2 }
 0xb2b   : > { %v1208_v60 = vpop.f32.mrf.mxu3 }
 0xb2c   : > { %v1209_v61 = vadd.f32 %v1208_v60, %v1186_v59  ;;  %v1188_v62 = vpop.f32.mrf.mxu2  ;;  %v1786_v59 = vld [vmem:[%s2530_s0 + $0x28] sm:$0xff] }
 0xb2d   : > { %v1500_v60 = vsel %vm641_vm1, %v1786_v59, 0 }
 0xb2e   : > { %v1219_v63 = vpack.c.bf16 %v1209_v61, %v1209_v61  ;;  %1510 = vmatpush.bf16.xpose.msrb.mxu3 %v1500_v60  ;;  %v1785_v61 = vld [vmem:[%s2530_s0 + $0x20] sm:$0xff] }
 0xb30   : > { %1681 = vmatmul.msk.bf16.vlgmr.msra.gmra.mxu0 %vm641_vm1, %v1219_v63  ;;  %v1497_v63 = vsel %vm641_vm1, %v1785_v61, 0 }
 0xb33   : > { %v1210_v0 = vpop.f32.mrf.mxu3 }
 0xb36   : > { %1511 = vmatpush.bf16.xpose.msrb.mxu3 %v1497_v63 }
 0xbad   : > { %v1247_v1 = vpop.f32.mrf.mxu0 }
 0xbae   : > { %v1248_v2 = vadd.f32 %v1850_v46, %v1247_v1  ;;  %v1784_v1 = vld [vmem:[%s2530_s0 + $0x18] sm:$0xff] }
 0xbb0   : > { %v1251_v4 = vadd.f32 %v1248_v2, %v2301_v6  ;;  %v1775_v6 = vld [vmem:[%s2467_s12 + $0x10] sm:$0xff] }
 0xbb1   : > { %1319 = vmatpush.bf16.msra.mxu1 %v1775_v6 }
 0xbb2   : > { %v1256_v5 = vsel %vm641_vm1, %v1251_v4, 0.0 }
 0xbb3   : > { %1257 = vadd.xlane.f32.xlu1 %v1256_v5  ;;  %v1494_v5 = vsel %vm641_vm1, %v1784_v1, 0 }
 0xbb4   : > { %1512 = vmatpush.bf16.xpose.msrb.mxu3 %v1494_v5 }
 0xbb5   : > { %v1249_v7 = vpop.f32.mrf.mxu0 }
 0xbb6   : > { %v1783_v7 = vld [vmem:[%s2530_s0 + $0x10] sm:$0xff] }
 0xc26   : > { %v1258_v8 = vpop.xlane.xlu1 %1257 }
 0xc27   : > { %v1259_v9 = vmul.f32 %v1258_v8, %v2161_v18  ;;  %v1491_v8 = vsel %vm641_vm1, %v1783_v7, 0 }
 0xc28   : > { %1513 = vmatpush.bf16.xpose.msrb.mxu3 %v1491_v8 }
 0xc29   : > { %v1260_v10 = vsub.f32 %v1251_v4, %v1259_v9  ;;  %v1782_v9 = vld [vmem:[%s2530_s0 + $0x8] sm:$0xff] }
 0xc2b   : > { %v1261_v11 = vmul.f32 %v1260_v10, %v1260_v10 }
 0xc2d   : > { %v1262_v13 = vsel %vm641_vm1, %v1261_v11, 0.0  ;;  %v1781_v11 = vld [vmem:[%s2530_s0] sm:$0xff] }
 0xc2e   : > { %1263 = vadd.xlane.f32.xlu2 %v1262_v13  ;;  %v1485_v13 = vsel %vm641_vm1, %v1781_v11, 0 }
 0xca1   : > { %v1264_v15 = vpop.xlane.xlu2 %1263 }
 0xca2   : > { %v1265_v16 = vmul.f32 %v1264_v15, %v2161_v18 }
 0xca4   : > { %v1266_v17 = vadd.f32 1e-12, %v1265_v16 }
 0xca6   : > { %1883 = vrsqrt.f32 %v1266_v17  ;;  %vm1273_vm6 = vweird.f32 %v1266_v17 }
 0xcac   : > { %v1884_v19 = vpop.eup %1883 }
 0xcad   : > { %v1268_v20 = vmul.f32 %v1884_v19, %v1266_v17  ;;  %vm1274_vm5 = vweird.f32 %v1884_v19 }
 0xcae   : > { %vm1275_vm7 = vmor %vm1273_vm6, %vm1274_vm5 }
 0xcaf   : > { %v1269_v21 = vmul.f32 %v1884_v19, %v1268_v20 }
 0xcb1   : > { %v1270_v22 = vmul.f32 0.5, %v1269_v21 }
 0xcb3   : > { %v1271_v50 = vsub.f32 1.5, %v1270_v22 }
 0xcb5   : > { %v1272_v48 = vmul.f32 %v1884_v19, %v1271_v50  ;;  %v1855_v50 = vld [vmem:[%s2526_s24 + $0x1] ss:$0 sm:$0xff] }
 0xcb7   : > { %v1276_v23 = vsel %vm1275_vm7, %v1884_v19, %v1272_v48 }
 0xcb8   : > { %v1277_v25 = vmul.f32 %v1276_v23, %v1260_v10  ;;  %v1488_v10 = vsel %vm641_vm1, %v1782_v9, 0 }
 0xcb9   : > { %1514 = vmatpush.bf16.xpose.msrb.mxu3 %v1488_v10 }
 0xcba   : > { %v1281_v26 = vmul.f32 %v1851_v51, %v1277_v25 }
 0xcbc   : > { %v1285_v27 = vadd.f32 %v1852_v24, %v1281_v26 }
 0xcbe   : > { %v1293_v29 = vpack.c.bf16 %v1285_v27, %v1285_v27 }
 0xcc0   : > { %1697 = vmatmul.msk.bf16.vlgmr.msra.gmra.mxu1 %vm641_vm1, %v1293_v29 }
 0xcc1   : > { %1515 = vmatpush.bf16.xpose.msrb.mxu3 %v1485_v13 }
 0xd3d   : > { %v1321_v35 = vpop.f32.mrf.mxu1 }
 0xd3e   : > { %v1322_v36 = vadd.f32 %v1853_v34, %v1321_v35 }
 0xd40   : > { %v1325_v37 = vmul.f32 %v1322_v36, %v1322_v36 }
 0xd42   : > { %v1326_v38 = vmul.f32 %v1325_v37, %v1322_v36 }
 0xd44   : > { %v1327_v3 = vmul.f32 0.044715, %v1326_v38 }
 0xd45   : > { %v1323_v39 = vpop.f32.mrf.mxu1 }
 0xd46   : > { %v1328_v40 = vadd.f32 %v1327_v3, %v1322_v36 }
 0xd48   : > { %v1329_v12 = vmul.f32 0.7978846, %v1328_v40 }
 0xd4a   : > { %1885 = vtanh.f32 %v1329_v12 }
 0xd50   : > { %v1886_v41 = vpop.eup %1885 }
 0xd51   : > { %v1331_v42 = vadd.f32 1.0, %v1886_v41 }
 0xd53   : > { %v1332_v43 = vmul.f32 0.5, %v1331_v42 }
 0xd55   : > { %v1333_v44 = vmul.f32 %v1332_v43, %v1322_v36 }
 0xd57   : > { %v1345_v45 = vpack.c.bf16 %v1333_v44, %v1333_v44 }
 0xd59   : > { %1723 = vmatmul.msk.bf16.vlgmr.msra.gmra.mxu2 %vm1004_vm0, %v1345_v45 }
 0xddc   : > { %v1385_v49 = vpop.f32.mrf.mxu2 }
 0xddd   : > { %v1386_v52 = vadd.f32 %v1854_v47, %v1385_v49 }
 0xddf   : > { %v1389_v53 = vadd.f32 %v1386_v52, %v1285_v27 }
 0xde1   : > { %v1394_v28 = vsel %vm641_vm1, %v1389_v53, 0.0 }
 0xde2   : > { %1395 = vadd.xlane.f32.xlu0 %v1394_v28 }
 0xde4   : > { %v1387_v54 = vpop.f32.mrf.mxu2 }
 0xe55   : > { %v1396_v62 = vpop.xlane.xlu0 %1395 }
 0xe56   : > { %v1397_v0 = vmul.f32 %v1396_v62, %v2161_v18 }
 0xe58   : > { %v1398_v46 = vsub.f32 %v1389_v53, %v1397_v0 }
 0xe5a   : > { %v1399_v2 = vmul.f32 %v1398_v46, %v1398_v46 }
 0xe5c   : > { %v1400_v4 = vsel %vm641_vm1, %v1399_v2, 0.0 }
 0xe5d   : > { %1401 = vadd.xlane.f32.xlu2 %v1400_v4 }
 0xed0   : > { %v1402_v14 = vpop.xlane.xlu2 %1401 }
 0xed1   : > { %v1403_v6 = vmul.f32 %v1402_v14, %v2161_v18  ;;  %v1856_v18 = vld [vmem:[%s2528_s14 + $0x1] ss:$0 sm:$0xff] }
 0xed3   : > { %v1404_v15 = vadd.f32 1e-12, %v1403_v6 }
 0xed5   : > { %1887 = vrsqrt.f32 %v1404_v15  ;;  %vm1411_vm9 = vweird.f32 %v1404_v15 }
 0xedb   : > { %v1888_v16 = vpop.eup %1887 }
 0xedc   : > { %v1406_v17 = vmul.f32 %v1888_v16, %v1404_v15  ;;  %vm1412_vm8 = vweird.f32 %v1888_v16 }
 0xedd   : > { %vm1413_vm10 = vmor %vm1411_vm9, %vm1412_vm8 }
 0xede   : > { %v1407_v19 = vmul.f32 %v1888_v16, %v1406_v17 }
 0xee0   : > { %v1408_v20 = vmul.f32 0.5, %v1407_v19 }
 0xee2   : > { %v1409_v21 = vsub.f32 1.5, %v1408_v20 }
 0xee4   : > { %v1410_v22 = vmul.f32 %v1888_v16, %v1409_v21 }
 0xee6   : > { %v1414_v48 = vsel %vm1413_vm10, %v1888_v16, %v1410_v22 }
 0xee7   : > { %v1415_v51 = vmul.f32 %v1414_v48, %v1398_v46 }
 0xee9   : > { %v1419_v23 = vmul.f32 %v1855_v50, %v1415_v51 }
 0xeeb   : > { %v1423_v24 = vadd.f32 %v1856_v18, %v1419_v23 }
 0xeed   : > { %v1424_v25 = vpack.c.bf16 %v1423_v24, %v1423_v24 }
 0xeef   : > { %1758 = vmatmul.msk.bf16.vlgmr.msrb.gmra.mxu3 %vm641_vm1, %v1424_v25 }
 0xf72   : > { %v1517_v26 = vpop.f32.mrf.mxu3 }
 0xf73   : > { %1521 = vst [vmem:[%s572_s16] sm:$0x1] %v1517_v26 }
 0xf74   : > { %1928 = shalt.err (!%p1925_p3)
}
 0xf75   : > { %1789 = dma.vmem_to_hbm [thread:$0]  (%p2114_p5), %s1534_s2, 16, %s1536_s1, %s1523_s30  }
 0xf7a   : > { %v1519_v27 = vpop.f32.mrf.mxu3 }
 0xf7b PF: > { %s2534_s27 = sld [smem:[#allocation12_spill]] }
 0xf7c   : > { %s2535_s26 = sld [smem:[#allocation9_spill]] }
 0xf81   : > { %p1795_p4 = scmp.ge.s32.totalorder %s2534_s27, 2 }
 0xf82   : > { %s1547_s0 = sand.u32 1, %s2535_s26  }
 0xf83   : > { %p1792_p7 = pnand %p1795_p4, %p2118_p6  ;;  %s1548_s22 = scalar_lea.sflag [#allocation6], %s1547_s0 }
 0xf85   : > { %p1793_p8 = pneg %p1792_p7 }
 0xf87   : > { %1948 = dma.done.wait (%p1793_p8), %s1548_s22, 16  }
 0xf88   : > { %1950 = vsyncadd (%p1793_p8), %s1548_s22, 4294967280  ;;  %s2537_s23 = sld [smem:[#allocation13_spill]] }
 0xf89   : > { %s2538_s1 = sld [smem:[#allocation10_spill]] }
 0xf8a   : > { %s2539_s22 = sld [smem:[#allocation11_spill]] }
 0xf8b   : > { %s2540_s2 = sld [smem:[#allocation14_spill]] }
 0xf8e   : > { %p37_p9 = scmp.ge.s32.totalorder %s2537_s23, 4  }
 0xf90   :  { %39 = sbr.rel (!%p37_p9) target bundleno = 27 (0x1b), region = 147 }
 0xf95   :  { %1553 = vsyncpa [#allocation6], 1 }
 0xf96   :  { %1555 = vsyncpa [#allocation6 + $0x1], 1 }

</bundles_post_ra>
